<compile_context>
chip_gen: v7x
topology: tpu7x:2x2x1
jax: 0.10.0
libtpu: 0.0.40
codegen_flags: <defaults>
</compile_context>

<pallas_src>
import functools

import jax
import jax.numpy as jnp
from jax.experimental import pallas as pl
from jax.experimental.pallas import tpu as pltpu

EPS = 1e-5  # PyTorch GroupNorm default eps


def _make_taps(a, H, W):
    """9 replicate-padded 3x3 taps of a channel-major (C, H*W) slab,
    stacked along sublanes -> (9*C, H*W).

    Lane shifts via pltpu.roll (circular); the replicate-pad boundary fix is a
    masked select against precomputed lane masks (wrap values are masked out).
    """
    C, HW = a.shape
    lane = jax.lax.broadcasted_iota(jnp.int32, (C, HW), 1)
    col = lane % W
    m_top = lane < W                    # first image row
    m_bot = lane >= (H - 1) * W         # last image row
    m_left = col == 0
    m_right = col == (W - 1)

    # Row-shifted bases: ky = 0, 1, 2  <->  row offset -1, 0, +1 (replicate).
    r_up = jnp.where(m_top, a, pltpu.roll(a, W, axis=1))
    r_dn = jnp.where(m_bot, a, pltpu.roll(a, HW - W, axis=1))

    taps = []
    for r in (r_up, a, r_dn):
        # Column shifts: kx = 0, 1, 2  <->  col offset -1, 0, +1 (replicate).
        c_l = jnp.where(m_left, r, pltpu.roll(r, 1, axis=1))
        c_r = jnp.where(m_right, r, pltpu.roll(r, HW - 1, axis=1))
        taps.extend((c_l, r, c_r))
    return jnp.concatenate(taps, axis=0)      # (9*C, H*W), tap order ky*3+kx


def _residual_conv_block_kernel(
    x_ref,                    # (1, Cin, H*W)
    g1_ref, be1_ref,          # (Cin, 1)           GroupNorm(1, Cin) affine
    w1_ref, b1_ref,           # (Chid, 9*Cin), (Chid, 1)
    agg_ref,                  # (Chid, Chid)       group-averaging matrix (GN2)
    g2_ref, be2_ref,          # (Chid, 1)
    w2_ref, b2_ref,           # (Cout, 9*Chid), (Cout, 1)
    ws_ref, bs_ref,           # (Cout, Cin), (Cout, 1)   1x1 skip conv
    out_ref,                  # (1, Cout, H*W)
    *, H, W,
):
    x = x_ref[0]                                           # (Cin, H*W) f32

    # ---- GroupNorm(num_groups=1) over (C,H,W) + ReLU ----
    mu = jnp.mean(x)
    var = jnp.mean((x - mu) * (x - mu))
    h = (x - mu) * jax.lax.rsqrt(var + EPS)
    h = h * g1_ref[...] + be1_ref[...]                     # per-channel affine
    h = jnp.maximum(h, 0.0)

    # ---- conv1 3x3 (replicate pad) as one im2col matmul ----
    t1 = _make_taps(h, H, W)                               # (9*Cin, H*W)
    y1 = jnp.dot(w1_ref[...], t1,
                 preferred_element_type=jnp.float32) + b1_ref[...]  # (Chid, H*W)

    # ---- GroupNorm(G groups over hidden channels) + ReLU ----
    # Per-channel stats reduced over lanes, then averaged within each group via
    # a (Chid, Chid) averaging matrix (avoids cross-sublane reshapes).
    mean_c = jnp.mean(y1, axis=1, keepdims=True)           # (Chid, 1)
    msq_c = jnp.mean(y1 * y1, axis=1, keepdims=True)       # (Chid, 1)
    gmean = jnp.dot(agg_ref[...], mean_c, preferred_element_type=jnp.float32)
    gmsq = jnp.dot(agg_ref[...], msq_c, preferred_element_type=jnp.float32)
    gvar = jnp.maximum(gmsq - gmean * gmean, 0.0)          # clamp: no NaN from cancellation
    h2 = (y1 - gmean) * jax.lax.rsqrt(gvar + EPS)
    h2 = h2 * g2_ref[...] + be2_ref[...]
    h2 = jnp.maximum(h2, 0.0)                              # (Chid, H*W)

    # ---- conv2 3x3 as one im2col matmul ----
    t2 = _make_taps(h2, H, W)                              # (9*Chid, H*W)
    y2 = jnp.dot(w2_ref[...], t2,
                 preferred_element_type=jnp.float32) + b2_ref[...]  # (Cout, H*W)

    # ---- skip connection (1x1 conv) + residual add ----
    skip = jnp.dot(ws_ref[...], x,
                   preferred_element_type=jnp.float32) + bs_ref[...]
    out_ref[0] = y2 + skip                                 # lane-dense store


def residual_conv_block(x_nchw, params, num_groups2):
    """Pallas forward of ResidualConvBlock (relu / group_norm / replicate pad)."""
    N, Cin, H, W = x_nchw.shape
    HW = H * W
    w1 = params["w1"].astype(jnp.float32)                  # (Chid, Cin, 3, 3) OIHW
    w2 = params["w2"].astype(jnp.float32)                  # (Cout, Chid, 3, 3)
    Chid, Cout = w1.shape[0], w2.shape[0]

    # Flatten weights to 2D matching tap order (ky*3+kx)*C + c.
    w1f = jnp.transpose(w1, (0, 2, 3, 1)).reshape(Chid, 9 * Cin)
    w2f = jnp.transpose(w2, (0, 2, 3, 1)).reshape(Cout, 9 * Chid)

    if params.get("ws") is not None:
        ws = params["ws"].reshape(Cout, Cin).astype(jnp.float32)
        bs_vec = params["bs"].astype(jnp.float32)
    else:  # in_channels == out_channels -> Identity skip (exact via eye/zeros)
        ws = jnp.eye(Cout, Cin, dtype=jnp.float32)
        bs_vec = jnp.zeros((Cout,), jnp.float32)

    cg = Chid // num_groups2
    gid = jnp.arange(Chid) // cg
    agg = (gid[:, None] == gid[None, :]).astype(jnp.float32) / cg  # (Chid, Chid)

    x = x_nchw.reshape(N, Cin, HW).astype(jnp.float32)     # free reshape, no transpose

    col = lambda v: v.reshape(-1, 1).astype(jnp.float32)

    def full_spec(shape):
        zeros = (0,) * len(shape)
        return pl.BlockSpec(shape, lambda n, zeros=zeros: zeros)

    kernel = functools.partial(_residual_conv_block_kernel, H=H, W=W)

    out_flat = pl.pallas_call(
        kernel,
        out_shape=jax.ShapeDtypeStruct((N, Cout, HW), jnp.float32),
        grid_spec=pltpu.PrefetchScalarGridSpec(
            num_scalar_prefetch=0,
            grid=(N,),
            in_specs=[
                pl.BlockSpec((1, Cin, HW), lambda n: (n, 0, 0)),
                full_spec((Cin, 1)), full_spec((Cin, 1)),
                full_spec((Chid, 9 * Cin)), full_spec((Chid, 1)),
                full_spec((Chid, Chid)),
                full_spec((Chid, 1)), full_spec((Chid, 1)),
                full_spec((Cout, 9 * Chid)), full_spec((Cout, 1)),
                full_spec((Cout, Cin)), full_spec((Cout, 1)),
            ],
            out_specs=pl.BlockSpec((1, Cout, HW), lambda n: (n, 0, 0)),
        ),
        compiler_params=pltpu.CompilerParams(
            dimension_semantics=("parallel",)),   # batch is independent -> 2 TCs on v7x
    )(
        x,
        col(params["gn1_gamma"]), col(params["gn1_beta"]),
        w1f, col(params["b1"]),
        agg,
        col(params["gn2_gamma"]), col(params["gn2_beta"]),
        w2f, col(params["b2"]),
        ws, col(bs_vec),
    )
    return out_flat.reshape(N, Cout, H, W)                 # free reshape back to NCHW


# ---------------- plain-JAX reference (for correctness check) ----------------
def _conv2d_replicate_ref(x, w_oihw, b, pad):
    if pad > 0:
        x = jnp.pad(x, ((0, 0), (0, 0), (pad, pad), (pad, pad)), mode="edge")
    y = jax.lax.conv_general_dilated(
        x, w_oihw, window_strides=(1, 1), padding="VALID",
        dimension_numbers=("NCHW", "OIHW", "NCHW"),
        precision=jax.lax.Precision.HIGHEST)
    return y + b.reshape(1, -1, 1, 1)


def _ref_forward(x, p, num_groups2):
    N, C, H, W = x.shape
    mu = x.mean(axis=(1, 2, 3), keepdims=True)
    var = x.var(axis=(1, 2, 3), keepdims=True)
    h = (x - mu) / jnp.sqrt(var + EPS)
    h = h * p["gn1_gamma"].reshape(1, -1, 1, 1) + p["gn1_beta"].reshape(1, -1, 1, 1)
    h = jnp.maximum(h, 0.0)
    h = _conv2d_replicate_ref(h, p["w1"], p["b1"], pad=1)
    Chid = h.shape[1]
    cg = Chid // num_groups2
    hg = h.reshape(N, num_groups2, cg, H, W)
    mu2 = hg.mean(axis=(2, 3, 4), keepdims=True)
    var2 = hg.var(axis=(2, 3, 4), keepdims=True)
    h = ((hg - mu2) / jnp.sqrt(var2 + EPS)).reshape(N, Chid, H, W)
    h = h * p["gn2_gamma"].reshape(1, -1, 1, 1) + p["gn2_beta"].reshape(1, -1, 1, 1)
    h = jnp.maximum(h, 0.0)
    h = _conv2d_replicate_ref(h, p["w2"], p["b2"], pad=1)
    skip = _conv2d_replicate_ref(x, p["ws"], p["bs"], pad=0)
    return h + skip


if __name__ == "__main__":
    N, Cin, Chid, Cout, H, W = 2, 8, 32, 16, 16, 16
    num_groups2 = Chid // 32  # module: hidden_channels // 32 for norm='group_norm'
    assert num_groups2 >= 1 and Chid % num_groups2 == 0

    key = jax.random.PRNGKey(0)
    ks = jax.random.split(key, 11)
    params = dict(
        gn1_gamma=1.0 + 0.1 * jax.random.normal(ks[0], (Cin,), jnp.float32),
        gn1_beta=0.1 * jax.random.normal(ks[1], (Cin,), jnp.float32),
        w1=0.1 * jax.random.normal(ks[2], (Chid, Cin, 3, 3), jnp.float32),
        b1=0.1 * jax.random.normal(ks[3], (Chid,), jnp.float32),
        gn2_gamma=1.0 + 0.1 * jax.random.normal(ks[4], (Chid,), jnp.float32),
        gn2_beta=0.1 * jax.random.normal(ks[5], (Chid,), jnp.float32),
        w2=0.1 * jax.random.normal(ks[6], (Cout, Chid, 3, 3), jnp.float32),
        b2=0.1 * jax.random.normal(ks[7], (Cout,), jnp.float32),
        ws=0.1 * jax.random.normal(ks[8], (Cout, Cin, 1, 1), jnp.float32),
        bs=0.1 * jax.random.normal(ks[9], (Cout,), jnp.float32),
    )
    x = jax.random.normal(ks[10], (N, Cin, H, W), jnp.float32)

    out = jax.block_until_ready(residual_conv_block(x, params, num_groups2))
    ref = jax.block_until_ready(_ref_forward(x, params, num_groups2))

    assert out.shape == (N, Cout, H, W) and out.dtype == jnp.float32
    if not jnp.allclose(out, ref, atol=2e-3, rtol=2e-3):
        raise AssertionError(
            f"mismatch: max abs diff = {float(jnp.max(jnp.abs(out - ref)))}")
    print("KERNEL_OK")
</pallas_src>

<mosaic_0001>
module attributes {stable_mosaic.version = 11 : i64} {
  func.func @_residual_conv_block_kernel(%arg0: i32, %arg1: memref<1x8x256xf32, #tpu.memory_space<vmem>>, %arg2: memref<8x1xf32, #tpu.memory_space<vmem>>, %arg3: memref<8x1xf32, #tpu.memory_space<vmem>>, %arg4: memref<32x72xf32, #tpu.memory_space<vmem>>, %arg5: memref<32x1xf32, #tpu.memory_space<vmem>>, %arg6: memref<32x32xf32, #tpu.memory_space<vmem>>, %arg7: memref<32x1xf32, #tpu.memory_space<vmem>>, %arg8: memref<32x1xf32, #tpu.memory_space<vmem>>, %arg9: memref<16x288xf32, #tpu.memory_space<vmem>>, %arg10: memref<16x1xf32, #tpu.memory_space<vmem>>, %arg11: memref<16x8xf32, #tpu.memory_space<vmem>>, %arg12: memref<16x1xf32, #tpu.memory_space<vmem>>, %arg13: memref<1x16x256xf32, #tpu.memory_space<vmem>>) attributes {dimension_semantics = [#tpu.dimension_semantics<parallel>], iteration_bounds = array<i64: 2>, scalar_prefetch = 0 : i64, scratch_operands = 0 : i64, tpu.core_type = #tpu.core_type<tc>, window_params = [{transform_indices = @transform_0, window_bounds = array<i64: 1, 8, 256>}, {pipeline_mode = #tpu.pipeline_mode<synchronous>, transform_indices = @transform_1, window_bounds = array<i64: 8, 1>}, {pipeline_mode = #tpu.pipeline_mode<synchronous>, transform_indices = @transform_2, window_bounds = array<i64: 8, 1>}, {pipeline_mode = #tpu.pipeline_mode<synchronous>, transform_indices = @transform_3, window_bounds = array<i64: 32, 72>}, {pipeline_mode = #tpu.pipeline_mode<synchronous>, transform_indices = @transform_4, window_bounds = array<i64: 32, 1>}, {pipeline_mode = #tpu.pipeline_mode<synchronous>, transform_indices = @transform_5, window_bounds = array<i64: 32, 32>}, {pipeline_mode = #tpu.pipeline_mode<synchronous>, transform_indices = @transform_6, window_bounds = array<i64: 32, 1>}, {pipeline_mode = #tpu.pipeline_mode<synchronous>, transform_indices = @transform_7, window_bounds = array<i64: 32, 1>}, {pipeline_mode = #tpu.pipeline_mode<synchronous>, transform_indices = @transform_8, window_bounds = array<i64: 16, 288>}, {pipeline_mode = #tpu.pipeline_mode<synchronous>, transform_indices = @transform_9, window_bounds = array<i64: 16, 1>}, {pipeline_mode = #tpu.pipeline_mode<synchronous>, transform_indices = @transform_10, window_bounds = array<i64: 16, 8>}, {pipeline_mode = #tpu.pipeline_mode<synchronous>, transform_indices = @transform_11, window_bounds = array<i64: 16, 1>}, {transform_indices = @transform_12, window_bounds = array<i64: 1, 16, 256>}]} {
    %c0 = arith.constant 0 : index
    %c0_0 = arith.constant 0 : index
    %c0_1 = arith.constant 0 : index
    %0 = vector.load %arg1[%c0, %c0_0, %c0_1] : memref<1x8x256xf32, #tpu.memory_space<vmem>>, vector<1x8x256xf32>
    %1 = vector.shape_cast %0 : vector<1x8x256xf32> to vector<8x256xf32>
    %2 = vector.shape_cast %1 : vector<8x256xf32> to vector<1x8x256xf32>
    %cst = arith.constant dense<0.000000e+00> : vector<1xf32>
    %3 = vector.multi_reduction <add>, %2, %cst [1, 2] : vector<1x8x256xf32> to vector<1xf32>
    %4 = vector.shape_cast %3 : vector<1xf32> to vector<1x1x1xf32>
    %5 = vector.extract %4[0, 0, 0] : f32 from vector<1x1x1xf32>
    %cst_2 = arith.constant 2.048000e+03 : f32
    %6 = arith.divf %5, %cst_2 : f32
    %7 = vector.broadcast %6 : f32 to vector<8x256xf32>
    %8 = arith.subf %1, %7 : vector<8x256xf32>
    %9 = vector.broadcast %6 : f32 to vector<8x256xf32>
    %10 = arith.subf %1, %9 : vector<8x256xf32>
    %11 = arith.mulf %8, %10 : vector<8x256xf32>
    %12 = vector.shape_cast %11 : vector<8x256xf32> to vector<1x8x256xf32>
    %cst_3 = arith.constant dense<0.000000e+00> : vector<1xf32>
    %13 = vector.multi_reduction <add>, %12, %cst_3 [1, 2] : vector<1x8x256xf32> to vector<1xf32>
    %14 = vector.shape_cast %13 : vector<1xf32> to vector<1x1x1xf32>
    %15 = vector.extract %14[0, 0, 0] : f32 from vector<1x1x1xf32>
    %cst_4 = arith.constant 2.048000e+03 : f32
    %16 = arith.divf %15, %cst_4 : f32
    %17 = vector.broadcast %6 : f32 to vector<8x256xf32>
    %18 = arith.subf %1, %17 : vector<8x256xf32>
    %cst_5 = arith.constant 9.99999974E-6 : f32
    %19 = arith.addf %16, %cst_5 : f32
    %20 = math.rsqrt %19 : f32
    %21 = vector.broadcast %20 : f32 to vector<8x256xf32>
    %22 = arith.mulf %18, %21 : vector<8x256xf32>
    %c0_6 = arith.constant 0 : index
    %c0_7 = arith.constant 0 : index
    %23 = vector.load %arg2[%c0_6, %c0_7] : memref<8x1xf32, #tpu.memory_space<vmem>>, vector<8x1xf32>
    %24 = vector.broadcast %23 : vector<8x1xf32> to vector<8x256xf32>
    %25 = arith.mulf %22, %24 : vector<8x256xf32>
    %c0_8 = arith.constant 0 : index
    %c0_9 = arith.constant 0 : index
    %26 = vector.load %arg3[%c0_8, %c0_9] : memref<8x1xf32, #tpu.memory_space<vmem>>, vector<8x1xf32>
    %27 = vector.broadcast %26 : vector<8x1xf32> to vector<8x256xf32>
    %28 = arith.addf %25, %27 : vector<8x256xf32>
    %cst_10 = arith.constant 0.000000e+00 : f32
    %29 = vector.broadcast %cst_10 : f32 to vector<8x256xf32>
    %30 = arith.maximumf %28, %29 : vector<8x256xf32>
    %31 = tpu.iota {dimensions = array<i32: 1>} : vector<8x256xi32>
    %c16_i32 = arith.constant 16 : i32
    %c0_i32 = arith.constant 0 : i32
    %32 = arith.cmpi eq, %c16_i32, %c0_i32 : i32
    %c1_i32 = arith.constant 1 : i32
    %33 = arith.select %32, %c1_i32, %c16_i32 : i32
    %34 = vector.broadcast %33 : i32 to vector<8x256xi32>
    %35 = arith.remsi %31, %34 : vector<8x256xi32>
    %c0_i32_11 = arith.constant 0 : i32
    %36 = vector.broadcast %c0_i32_11 : i32 to vector<8x256xi32>
    %37 = arith.cmpi ne, %35, %36 : vector<8x256xi32>
    %c0_i32_12 = arith.constant 0 : i32
    %38 = vector.broadcast %c0_i32_12 : i32 to vector<8x256xi32>
    %39 = arith.cmpi slt, %35, %38 : vector<8x256xi32>
    %c0_i32_13 = arith.constant 0 : i32
    %40 = arith.cmpi slt, %33, %c0_i32_13 : i32
    %41 = vector.broadcast %40 : i1 to vector<8x256xi1>
    %42 = vector.broadcast %41 : vector<8x256xi1> to vector<8x256xi1>
    %43 = arith.xori %39, %42 : vector<8x256xi1>
    %44 = arith.andi %43, %37 : vector<8x256xi1>
    %45 = vector.broadcast %33 : i32 to vector<8x256xi32>
    %46 = arith.addi %35, %45 : vector<8x256xi32>
    %47 = arith.select %44, %46, %35 : vector<8x256xi1>, vector<8x256xi32>
    %c16_i32_14 = arith.constant 16 : i32
    %48 = vector.broadcast %c16_i32_14 : i32 to vector<8x256xi32>
    %49 = arith.cmpi slt, %31, %48 : vector<8x256xi32>
    %c240_i32 = arith.constant 240 : i32
    %50 = vector.broadcast %c240_i32 : i32 to vector<8x256xi32>
    %51 = arith.cmpi sge, %31, %50 : vector<8x256xi32>
    %c0_i32_15 = arith.constant 0 : i32
    %52 = vector.broadcast %c0_i32_15 : i32 to vector<8x256xi32>
    %53 = arith.cmpi eq, %47, %52 : vector<8x256xi32>
    %c15_i32 = arith.constant 15 : i32
    %54 = vector.broadcast %c15_i32 : i32 to vector<8x256xi32>
    %55 = arith.cmpi eq, %47, %54 : vector<8x256xi32>
    %c16_i32_16 = arith.constant 16 : i32
    %56 = tpu.dynamic_rotate %30 by %c16_i32_16 dim 1 : vector<8x256xf32>, i32 -> vector<8x256xf32>
    %57 = arith.select %49, %30, %56 : vector<8x256xi1>, vector<8x256xf32>
    %c240_i32_17 = arith.constant 240 : i32
    %58 = tpu.dynamic_rotate %30 by %c240_i32_17 dim 1 : vector<8x256xf32>, i32 -> vector<8x256xf32>
    %59 = arith.select %51, %30, %58 : vector<8x256xi1>, vector<8x256xf32>
    %c1_i32_18 = arith.constant 1 : i32
    %60 = tpu.dynamic_rotate %57 by %c1_i32_18 dim 1 : vector<8x256xf32>, i32 -> vector<8x256xf32>
    %61 = arith.select %53, %57, %60 : vector<8x256xi1>, vector<8x256xf32>
    %c255_i32 = arith.constant 255 : i32
    %62 = tpu.dynamic_rotate %57 by %c255_i32 dim 1 : vector<8x256xf32>, i32 -> vector<8x256xf32>
    %63 = arith.select %55, %57, %62 : vector<8x256xi1>, vector<8x256xf32>
    %c1_i32_19 = arith.constant 1 : i32
    %64 = tpu.dynamic_rotate %30 by %c1_i32_19 dim 1 : vector<8x256xf32>, i32 -> vector<8x256xf32>
    %65 = arith.select %53, %30, %64 : vector<8x256xi1>, vector<8x256xf32>
    %c255_i32_20 = arith.constant 255 : i32
    %66 = tpu.dynamic_rotate %30 by %c255_i32_20 dim 1 : vector<8x256xf32>, i32 -> vector<8x256xf32>
    %67 = arith.select %55, %30, %66 : vector<8x256xi1>, vector<8x256xf32>
    %c1_i32_21 = arith.constant 1 : i32
    %68 = tpu.dynamic_rotate %59 by %c1_i32_21 dim 1 : vector<8x256xf32>, i32 -> vector<8x256xf32>
    %69 = arith.select %53, %59, %68 : vector<8x256xi1>, vector<8x256xf32>
    %c255_i32_22 = arith.constant 255 : i32
    %70 = tpu.dynamic_rotate %59 by %c255_i32_22 dim 1 : vector<8x256xf32>, i32 -> vector<8x256xf32>
    %71 = arith.select %55, %59, %70 : vector<8x256xi1>, vector<8x256xf32>
    %72 = tpu.concatenate %61, %57, %63, %65, %30, %67, %69, %59, %71 in 0 : vector<8x256xf32>, vector<8x256xf32>, vector<8x256xf32>, vector<8x256xf32>, vector<8x256xf32>, vector<8x256xf32>, vector<8x256xf32>, vector<8x256xf32>, vector<8x256xf32> -> vector<72x256xf32>
    %c0_23 = arith.constant 0 : index
    %c0_24 = arith.constant 0 : index
    %73 = vector.load %arg4[%c0_23, %c0_24] : memref<32x72xf32, #tpu.memory_space<vmem>>, vector<32x72xf32>
    %cst_25 = arith.constant dense<0.000000e+00> : vector<32x256xf32>
    %74 = tpu.matmul %73, %72, %cst_25 {dimension_numbers = #tpu.dot_dimension_numbers<[1], [0], [0], [1], [0, 0, 1, 1], [], []>} : vector<32x72xf32>, vector<72x256xf32>, vector<32x256xf32> -> vector<32x256xf32>
    %c0_26 = arith.constant 0 : index
    %c0_27 = arith.constant 0 : index
    %75 = vector.load %arg5[%c0_26, %c0_27] : memref<32x1xf32, #tpu.memory_space<vmem>>, vector<32x1xf32>
    %76 = vector.broadcast %75 : vector<32x1xf32> to vector<32x256xf32>
    %77 = arith.addf %74, %76 : vector<32x256xf32>
    %cst_28 = arith.constant dense<0.000000e+00> : vector<32xf32>
    %78 = vector.multi_reduction <add>, %77, %cst_28 [1] : vector<32x256xf32> to vector<32xf32>
    %79 = vector.shape_cast %78 : vector<32xf32> to vector<32x1xf32>
    %cst_29 = arith.constant 2.560000e+02 : f32
    %80 = vector.broadcast %cst_29 : f32 to vector<32x1xf32>
    %81 = arith.divf %79, %80 : vector<32x1xf32>
    %82 = arith.mulf %77, %77 : vector<32x256xf32>
    %cst_30 = arith.constant dense<0.000000e+00> : vector<32xf32>
    %83 = vector.multi_reduction <add>, %82, %cst_30 [1] : vector<32x256xf32> to vector<32xf32>
    %84 = vector.shape_cast %83 : vector<32xf32> to vector<32x1xf32>
    %cst_31 = arith.constant 2.560000e+02 : f32
    %85 = vector.broadcast %cst_31 : f32 to vector<32x1xf32>
    %86 = arith.divf %84, %85 : vector<32x1xf32>
    %c0_32 = arith.constant 0 : index
    %c0_33 = arith.constant 0 : index
    %87 = vector.load %arg6[%c0_32, %c0_33] : memref<32x32xf32, #tpu.memory_space<vmem>>, vector<32x32xf32>
    %cst_34 = arith.constant dense<0.000000e+00> : vector<32x1xf32>
    %88 = tpu.matmul %87, %81, %cst_34 {dimension_numbers = #tpu.dot_dimension_numbers<[1], [0], [0], [1], [0, 0, 1, 1], [], []>} : vector<32x32xf32>, vector<32x1xf32>, vector<32x1xf32> -> vector<32x1xf32>
    %c0_35 = arith.constant 0 : index
    %c0_36 = arith.constant 0 : index
    %89 = vector.load %arg6[%c0_35, %c0_36] : memref<32x32xf32, #tpu.memory_space<vmem>>, vector<32x32xf32>
    %cst_37 = arith.constant dense<0.000000e+00> : vector<32x1xf32>
    %90 = tpu.matmul %89, %86, %cst_37 {dimension_numbers = #tpu.dot_dimension_numbers<[1], [0], [0], [1], [0, 0, 1, 1], [], []>} : vector<32x32xf32>, vector<32x1xf32>, vector<32x1xf32> -> vector<32x1xf32>
    %91 = arith.mulf %88, %88 : vector<32x1xf32>
    %92 = arith.subf %90, %91 : vector<32x1xf32>
    %cst_38 = arith.constant 0.000000e+00 : f32
    %93 = vector.broadcast %cst_38 : f32 to vector<32x1xf32>
    %94 = arith.maximumf %92, %93 : vector<32x1xf32>
    %95 = vector.broadcast %88 : vector<32x1xf32> to vector<32x256xf32>
    %96 = arith.subf %77, %95 : vector<32x256xf32>
    %cst_39 = arith.constant 9.99999974E-6 : f32
    %97 = vector.broadcast %cst_39 : f32 to vector<32x1xf32>
    %98 = arith.addf %94, %97 : vector<32x1xf32>
    %99 = math.rsqrt %98 : vector<32x1xf32>
    %100 = vector.broadcast %99 : vector<32x1xf32> to vector<32x256xf32>
    %101 = arith.mulf %96, %100 : vector<32x256xf32>
    %c0_40 = arith.constant 0 : index
    %c0_41 = arith.constant 0 : index
    %102 = vector.load %arg7[%c0_40, %c0_41] : memref<32x1xf32, #tpu.memory_space<vmem>>, vector<32x1xf32>
    %103 = vector.broadcast %102 : vector<32x1xf32> to vector<32x256xf32>
    %104 = arith.mulf %101, %103 : vector<32x256xf32>
    %c0_42 = arith.constant 0 : index
    %c0_43 = arith.constant 0 : index
    %105 = vector.load %arg8[%c0_42, %c0_43] : memref<32x1xf32, #tpu.memory_space<vmem>>, vector<32x1xf32>
    %106 = vector.broadcast %105 : vector<32x1xf32> to vector<32x256xf32>
    %107 = arith.addf %104, %106 : vector<32x256xf32>
    %cst_44 = arith.constant 0.000000e+00 : f32
    %108 = vector.broadcast %cst_44 : f32 to vector<32x256xf32>
    %109 = arith.maximumf %107, %108 : vector<32x256xf32>
    %110 = tpu.iota {dimensions = array<i32: 1>} : vector<32x256xi32>
    %c16_i32_45 = arith.constant 16 : i32
    %c0_i32_46 = arith.constant 0 : i32
    %111 = arith.cmpi eq, %c16_i32_45, %c0_i32_46 : i32
    %c1_i32_47 = arith.constant 1 : i32
    %112 = arith.select %111, %c1_i32_47, %c16_i32_45 : i32
    %113 = vector.broadcast %112 : i32 to vector<32x256xi32>
    %114 = arith.remsi %110, %113 : vector<32x256xi32>
    %c0_i32_48 = arith.constant 0 : i32
    %115 = vector.broadcast %c0_i32_48 : i32 to vector<32x256xi32>
    %116 = arith.cmpi ne, %114, %115 : vector<32x256xi32>
    %c0_i32_49 = arith.constant 0 : i32
    %117 = vector.broadcast %c0_i32_49 : i32 to vector<32x256xi32>
    %118 = arith.cmpi slt, %114, %117 : vector<32x256xi32>
    %c0_i32_50 = arith.constant 0 : i32
    %119 = arith.cmpi slt, %112, %c0_i32_50 : i32
    %120 = vector.broadcast %119 : i1 to vector<32x256xi1>
    %121 = vector.broadcast %120 : vector<32x256xi1> to vector<32x256xi1>
    %122 = arith.xori %118, %121 : vector<32x256xi1>
    %123 = arith.andi %122, %116 : vector<32x256xi1>
    %124 = vector.broadcast %112 : i32 to vector<32x256xi32>
    %125 = arith.addi %114, %124 : vector<32x256xi32>
    %126 = arith.select %123, %125, %114 : vector<32x256xi1>, vector<32x256xi32>
    %c16_i32_51 = arith.constant 16 : i32
    %127 = vector.broadcast %c16_i32_51 : i32 to vector<32x256xi32>
    %128 = arith.cmpi slt, %110, %127 : vector<32x256xi32>
    %c240_i32_52 = arith.constant 240 : i32
    %129 = vector.broadcast %c240_i32_52 : i32 to vector<32x256xi32>
    %130 = arith.cmpi sge, %110, %129 : vector<32x256xi32>
    %c0_i32_53 = arith.constant 0 : i32
    %131 = vector.broadcast %c0_i32_53 : i32 to vector<32x256xi32>
    %132 = arith.cmpi eq, %126, %131 : vector<32x256xi32>
    %c15_i32_54 = arith.constant 15 : i32
    %133 = vector.broadcast %c15_i32_54 : i32 to vector<32x256xi32>
    %134 = arith.cmpi eq, %126, %133 : vector<32x256xi32>
    %c16_i32_55 = arith.constant 16 : i32
    %135 = tpu.dynamic_rotate %109 by %c16_i32_55 dim 1 : vector<32x256xf32>, i32 -> vector<32x256xf32>
    %136 = arith.select %128, %109, %135 : vector<32x256xi1>, vector<32x256xf32>
    %c240_i32_56 = arith.constant 240 : i32
    %137 = tpu.dynamic_rotate %109 by %c240_i32_56 dim 1 : vector<32x256xf32>, i32 -> vector<32x256xf32>
    %138 = arith.select %130, %109, %137 : vector<32x256xi1>, vector<32x256xf32>
    %c1_i32_57 = arith.constant 1 : i32
    %139 = tpu.dynamic_rotate %136 by %c1_i32_57 dim 1 : vector<32x256xf32>, i32 -> vector<32x256xf32>
    %140 = arith.select %132, %136, %139 : vector<32x256xi1>, vector<32x256xf32>
    %c255_i32_58 = arith.constant 255 : i32
    %141 = tpu.dynamic_rotate %136 by %c255_i32_58 dim 1 : vector<32x256xf32>, i32 -> vector<32x256xf32>
    %142 = arith.select %134, %136, %141 : vector<32x256xi1>, vector<32x256xf32>
    %c1_i32_59 = arith.constant 1 : i32
    %143 = tpu.dynamic_rotate %109 by %c1_i32_59 dim 1 : vector<32x256xf32>, i32 -> vector<32x256xf32>
    %144 = arith.select %132, %109, %143 : vector<32x256xi1>, vector<32x256xf32>
    %c255_i32_60 = arith.constant 255 : i32
    %145 = tpu.dynamic_rotate %109 by %c255_i32_60 dim 1 : vector<32x256xf32>, i32 -> vector<32x256xf32>
    %146 = arith.select %134, %109, %145 : vector<32x256xi1>, vector<32x256xf32>
    %c1_i32_61 = arith.constant 1 : i32
    %147 = tpu.dynamic_rotate %138 by %c1_i32_61 dim 1 : vector<32x256xf32>, i32 -> vector<32x256xf32>
    %148 = arith.select %132, %138, %147 : vector<32x256xi1>, vector<32x256xf32>
    %c255_i32_62 = arith.constant 255 : i32
    %149 = tpu.dynamic_rotate %138 by %c255_i32_62 dim 1 : vector<32x256xf32>, i32 -> vector<32x256xf32>
    %150 = arith.select %134, %138, %149 : vector<32x256xi1>, vector<32x256xf32>
    %151 = tpu.concatenate %140, %136, %142, %144, %109, %146, %148, %138, %150 in 0 : vector<32x256xf32>, vector<32x256xf32>, vector<32x256xf32>, vector<32x256xf32>, vector<32x256xf32>, vector<32x256xf32>, vector<32x256xf32>, vector<32x256xf32>, vector<32x256xf32> -> vector<288x256xf32>
    %c0_63 = arith.constant 0 : index
    %c0_64 = arith.constant 0 : index
    %152 = vector.load %arg9[%c0_63, %c0_64] : memref<16x288xf32, #tpu.memory_space<vmem>>, vector<16x288xf32>
    %cst_65 = arith.constant dense<0.000000e+00> : vector<16x256xf32>
    %153 = tpu.matmul %152, %151, %cst_65 {dimension_numbers = #tpu.dot_dimension_numbers<[1], [0], [0], [1], [0, 0, 1, 1], [], []>} : vector<16x288xf32>, vector<288x256xf32>, vector<16x256xf32> -> vector<16x256xf32>
    %c0_66 = arith.constant 0 : index
    %c0_67 = arith.constant 0 : index
    %154 = vector.load %arg10[%c0_66, %c0_67] : memref<16x1xf32, #tpu.memory_space<vmem>>, vector<16x1xf32>
    %155 = vector.broadcast %154 : vector<16x1xf32> to vector<16x256xf32>
    %156 = arith.addf %153, %155 : vector<16x256xf32>
    %c0_68 = arith.constant 0 : index
    %c0_69 = arith.constant 0 : index
    %157 = vector.load %arg11[%c0_68, %c0_69] : memref<16x8xf32, #tpu.memory_space<vmem>>, vector<16x8xf32>
    %cst_70 = arith.constant dense<0.000000e+00> : vector<16x256xf32>
    %158 = tpu.matmul %157, %1, %cst_70 {dimension_numbers = #tpu.dot_dimension_numbers<[1], [0], [0], [1], [0, 0, 1, 1], [], []>} : vector<16x8xf32>, vector<8x256xf32>, vector<16x256xf32> -> vector<16x256xf32>
    %c0_71 = arith.constant 0 : index
    %c0_72 = arith.constant 0 : index
    %159 = vector.load %arg12[%c0_71, %c0_72] : memref<16x1xf32, #tpu.memory_space<vmem>>, vector<16x1xf32>
    %160 = vector.broadcast %159 : vector<16x1xf32> to vector<16x256xf32>
    %161 = arith.addf %158, %160 : vector<16x256xf32>
    %162 = arith.addf %156, %161 : vector<16x256xf32>
    %c0_73 = arith.constant 0 : index
    %c0_74 = arith.constant 0 : index
    %c0_75 = arith.constant 0 : index
    %163 = vector.load %arg13[%c0_73, %c0_74, %c0_75] : memref<1x16x256xf32, #tpu.memory_space<vmem>>, vector<1x16x256xf32>
    %164 = vector.shape_cast %163 : vector<1x16x256xf32> to vector<16x256xf32>
    %165 = vector.shape_cast %162 : vector<16x256xf32> to vector<1x16x256xf32>
    tpu.vector_store %arg13[%c0_73, %c0_74, %c0_75], %165 {strides = array<i32>} : memref<1x16x256xf32, #tpu.memory_space<vmem>>, vector<1x16x256xf32>,
    return
  }
  func.func @transform_0(%arg0: i32) -> (i32, i32, i32) {
    %c0_i32 = arith.constant 0 : i32
    %c0_i32_0 = arith.constant 0 : i32
    %c0_i32_1 = arith.constant 0 : i32
    return %arg0, %c0_i32, %c0_i32_0 : i32, i32, i32
  }
  func.func @transform_1(%arg0: i32) -> (i32, i32) {
    %c0_i32 = arith.constant 0 : i32
    %c0_i32_0 = arith.constant 0 : i32
    %c0_i32_1 = arith.constant 0 : i32
    return %c0_i32, %c0_i32_0 : i32, i32
  }
  func.func @transform_2(%arg0: i32) -> (i32, i32) {
    %c0_i32 = arith.constant 0 : i32
    %c0_i32_0 = arith.constant 0 : i32
    %c0_i32_1 = arith.constant 0 : i32
    return %c0_i32, %c0_i32_0 : i32, i32
  }
  func.func @transform_3(%arg0: i32) -> (i32, i32) {
    %c0_i32 = arith.constant 0 : i32
    %c0_i32_0 = arith.constant 0 : i32
    %c0_i32_1 = arith.constant 0 : i32
    return %c0_i32, %c0_i32_0 : i32, i32
  }
  func.func @transform_4(%arg0: i32) -> (i32, i32) {
    %c0_i32 = arith.constant 0 : i32
    %c0_i32_0 = arith.constant 0 : i32
    %c0_i32_1 = arith.constant 0 : i32
    return %c0_i32, %c0_i32_0 : i32, i32
  }
  func.func @transform_5(%arg0: i32) -> (i32, i32) {
    %c0_i32 = arith.constant 0 : i32
    %c0_i32_0 = arith.constant 0 : i32
    %c0_i32_1 = arith.constant 0 : i32
    return %c0_i32, %c0_i32_0 : i32, i32
  }
  func.func @transform_6(%arg0: i32) -> (i32, i32) {
    %c0_i32 = arith.constant 0 : i32
    %c0_i32_0 = arith.constant 0 : i32
    %c0_i32_1 = arith.constant 0 : i32
    return %c0_i32, %c0_i32_0 : i32, i32
  }
  func.func @transform_7(%arg0: i32) -> (i32, i32) {
    %c0_i32 = arith.constant 0 : i32
    %c0_i32_0 = arith.constant 0 : i32
    %c0_i32_1 = arith.constant 0 : i32
    return %c0_i32, %c0_i32_0 : i32, i32
  }
  func.func @transform_8(%arg0: i32) -> (i32, i32) {
    %c0_i32 = arith.constant 0 : i32
    %c0_i32_0 = arith.constant 0 : i32
    %c0_i32_1 = arith.constant 0 : i32
    return %c0_i32, %c0_i32_0 : i32, i32
  }
  func.func @transform_9(%arg0: i32) -> (i32, i32) {
    %c0_i32 = arith.constant 0 : i32
    %c0_i32_0 = arith.constant 0 : i32
    %c0_i32_1 = arith.constant 0 : i32
    return %c0_i32, %c0_i32_0 : i32, i32
  }
  func.func @transform_10(%arg0: i32) -> (i32, i32) {
    %c0_i32 = arith.constant 0 : i32
    %c0_i32_0 = arith.constant 0 : i32
    %c0_i32_1 = arith.constant 0 : i32
    return %c0_i32, %c0_i32_0 : i32, i32
  }
  func.func @transform_11(%arg0: i32) -> (i32, i32) {
    %c0_i32 = arith.constant 0 : i32
    %c0_i32_0 = arith.constant 0 : i32
    %c0_i32_1 = arith.constant 0 : i32
    return %c0_i32, %c0_i32_0 : i32, i32
  }
  func.func @transform_12(%arg0: i32) -> (i32, i32, i32) {
    %c0_i32 = arith.constant 0 : i32
    %c0_i32_0 = arith.constant 0 : i32
    %c0_i32_1 = arith.constant 0 : i32
    return %arg0, %c0_i32, %c0_i32_0 : i32, i32, i32
  }
}

</mosaic_0001>

<bundles_post_ra>
// kernel: tpu_custom_call.1
= control target key start
LH: loop header
LB: loop body
LE: loop exit
PB: predicated region body
PF: predicated region fallthrough
CT: control target
= control target key end

     0   :  { %s3168_s0 = inlined_call_operand.vmem [shape: f32[2,8,256], index: 0, kind: input, shape index: {}]   ;;  %s3169_s1 = inlined_call_operand.vmem [shape: f32[8,1], index: 1, kind: input, shape index: {}]   ;;  %s3170_s2 = inlined_call_operand.vmem [shape: f32[8,1], index: 2, kind: input, shape index: {}]   ;;  %s3171_s3 = inlined_call_operand.vmem [shape: f32[32,72], index: 3, kind: input, shape index: {}]   ;;  %s3172_s4 = inlined_call_operand.vmem [shape: f32[32,1], index: 4, kind: input, shape index: {}]   ;;  %s3173_s5 = inlined_call_operand.vmem [shape: f32[32,32], index: 5, kind: input, shape index: {}]   ;;  %s3174_s6 = inlined_call_operand.vmem [shape: f32[32,1], index: 6, kind: input, shape index: {}]   ;;  %s3175_s7 = inlined_call_operand.vmem [shape: f32[32,1], index: 7, kind: input, shape index: {}]   ;;  %s3176_s8 = inlined_call_operand.vmem [shape: f32[16,288], index: 8, kind: input, shape index: {}]   ;;  %s3177_s9 = inlined_call_operand.vmem [shape: f32[16,1], index: 9, kind: input, shape index: {}]   ;;  %s3178_s10 = inlined_call_operand.vmem [shape: f32[16,8], index: 10, kind: input, shape index: {}]   ;;  %s3179_s11 = inlined_call_operand.vmem [shape: f32[16,1], index: 11, kind: input, shape index: {}]   ;;  %s3180_s12 = inlined_call_operand.hbm [shape: f32[2,16,256], index: 12, kind: output, shape index: {}]  }
   0x1   :  { %3187 = sst [smem:[#allocation5_spill]] %s3168_s0 }
   0x2   :  { %3188 = sst [smem:[#allocation6_spill]] %s3169_s1 }
   0x3   :  { %3189 = sst [smem:[#allocation7_spill]] %s3170_s2 }
   0x4   :  { %17 = vsyncpa [#allocation3], 0 }
   0x5   :  { %19 = vsyncpa [#allocation3 + $0x1], 0  ;;  %s2281_s21 = smov 0   ;;  %s2283_s22 = smov 0  }
   0x6   :  { %s2285_s23 = smov 0   ;;  %s2287_s24 = smov 0  }
   0x7 LB: > { %s2302_s25 = sadd.s32 4294967295, %s2206_s24   ;;  %s1694_s26 = sadd.s32 4294967294, %s2206_s24   ;;  %s2206_s24 = sphi %s2287_s24, %s3209_s24   ;;  %s2202_s23 = sphi %s2285_s23, %s3208_s23   ;;  %s2198_s22 = sphi %s2283_s22, %s3207_s22   ;;  %s2194_s21 = sphi %s2281_s21, %s3206_s21  }
   0x8   : > { %s2306_s27 = sadd.s32 1, %s2206_s24   ;;  %s289_s28 = sadd.s32 1, %s2202_s23 }
   0x9   : > { %s286_s29 = ssub.s32 %s2206_s24, %s2306_s27  ;;  %p299_p0 = scmp.ne.s32.totalorder %s2202_s23, %s2198_s22 }
   0xa   : > { %p287_p1 = scmp.eq.s32.totalorder %s286_s29, 0  ;;  %p300_p2 = scmp.eq.s32.totalorder %s2302_s25, 1 }
   0xb   : > { %p305_p3 = scmp.ne.s32.totalorder %s2198_s22, %s2194_s21  ;;  %p306_p4 = scmp.eq.s32.totalorder %s1694_s26, 1 }
   0xc   : > { %s2317_s30 = scalar_select %p287_p1, %s2202_s23, %s289_s28  }
   0xd   : > { %p2319_p5 = por %p300_p2, %p299_p0  ;;  %p2323_p6 = por %p306_p4, %p305_p3 }
   0xe   : > { %p1697_p7 = scmp.ge.s32.totalorder %s2206_s24, 1  ;;  %p365_p8 = scmp.lt.s32.totalorder %s2206_s24, 3 }
  0x10   : > { %p366_p9 = pnand %p1697_p7, %p365_p8 }
  0x11   : > { %p407_p10 = scmp.lt.s32.totalorder (!%p366_p9), %s2302_s25, 1  ;;  %s3192_s0 = sld [smem:[#allocation5_spill]] (!%p366_p9)  ;;  %v2208_v4 = vmov (!%p366_p9), 0   ;;  %v470_v40 = vlaneseq (!%p366_p9)  ;;  %v2213_v56 = vmov (!%p366_p9), 0.0   ;;  %v576_v57 = vld [vmem:[%s3172_s4] sm:$0xff] (!%p366_p9)  ;;  %v578_v58 = vld [vmem:[%s3172_s4 + $0x10] sm:$0xff] (!%p366_p9) }
  0x12   : > { %369 = sbr.rel (%p366_p9) target bundleno = 2091 (0x82b), region = 68  ;;  %s3193_s1 = sld [smem:[#allocation6_spill]] (!%p366_p9)  ;;  %1940 = vset.pattern.permute.xlu1 (!%p366_p9), %v2208_v4  ;;  %1971 = vset.pattern.permute.xlu0 (!%p366_p9), %v2208_v4  ;;  %v579_v59 = vld [vmem:[%s3172_s4 + $0x18] sm:$0xff] (!%p366_p9)  ;;  %v577_v60 = vld [vmem:[%s3172_s4 + $0x8] sm:$0xff] (!%p366_p9)  ;;  %vm600_vm9 = vcmask (!%p366_p9), 588800   ;;  %vm747_vm10 = vcmask (!%p366_p9), 261120  }
  0x13   : > { %s3194_s2 = sld [smem:[#allocation7_spill]] (!%p366_p9)  ;;  %v2356_v41 = vand.u32 (!%p366_p9), 127, %v470_v40  ;;  %677 = vmatprep.mubr.f32.mxu1 (!%p366_p9), %v2213_v56  ;;  %vm1526_vm11 = vcmask (!%p366_p9), 64512  }
  0x15   : > { %v2359_v42 = vadd.s32 (!%p366_p9), 128, %v2356_v41  ;;  %vm497_vm0 = vcmp.lt.s32.totalorder (!%p366_p9), %v2356_v41, 16  ;;  %vm517_vm1 = vcmp.lt.s32.totalorder (!%p366_p9), %v2356_v41, 112  ;;  %v477_v63 = vand.u32 (!%p366_p9), 15, %v2356_v41 }
  0x16   : > { %vm526_vm3 = vcmp.lt.s32.totalorder (!%p366_p9), %v2356_v41, 1  ;;  %vm535_vm4 = vcmp.lt.s32.totalorder (!%p366_p9), %v2356_v41, 127 }
  0x17   : > { %vm500_vm2 = vcmp.ge.s32.totalorder (!%p366_p9), %v2359_v42, 240  ;;  %v484_v62 = vand.u32 (!%p366_p9), 15, %v2359_v42  ;;  %vm2423_vm7 = vcmp.eq.s32.totalorder (!%p366_p9), %v477_v63, 0  ;;  %vm2427_vm8 = vcmp.eq.s32.totalorder (!%p366_p9), %v477_v63, 15  ;;  %v1341_v42 = vld [vmem:[%s3177_s9 + $0x8] sm:$0xff] (!%p366_p9) }
  0x18   : > { %v452_v3 = vld [vmem:[%s3193_s1] sm:$0xff] (!%p366_p9) }
  0x19   : > { %s408_s15 = scalar_select %p407_p10, %s2302_s25, 1  ;;  %455 = vperm.xlu1 %1940, %v452_v3   ;;  %v460_v18 = vld [vmem:[%s3194_s2] sm:$0xff]  ;;  %vm2415_vm5 = vcmp.eq.s32.totalorder %v484_v62, 0  ;;  %vm2419_vm6 = vcmp.eq.s32.totalorder %v484_v62, 15 }
  0x1b   : > { %s1722_s16 = sshll.u32 %s408_s15, 4  ;;  %s3181_s15 = smov 1  }
  0x1c   : > { %s2334_s19 = scalar_lea.vmem %s3192_s0, %s1722_s16  ;;  %s2212_s16 = smov 127  }
  0x1d   : > { %v412_v0 = vld [vmem:[%s2334_s19] sm:$0xff]  ;;  %v413_v1 = vld [vmem:[%s2334_s19 + $0x8] sm:$0xff]  ;;  %463 = vperm.xlu1 %1940, %v460_v18   ;;  %s3203_s0 = smov 16  }
  0x1e   : > { %v414_v2 = vadd.f32 %v413_v1, %v412_v0 }
  0x20   : > { %415 = vadd.xlane.f32.xlu0 %v414_v2 }
  0x98   : > { %v456_v28 = vpop.permute.xlu1 %455 }
  0x9c   : > { %v464_v34 = vpop.permute.xlu1 %463 }
  0xad   : > { %v416_v5 = vpop.xlane.xlu0 %415 }
  0xae   : > { %v417_v6 = vrot.slane %v416_v5, 4 }
  0xb0   : > { %v418_v7 = vadd.f32 %v417_v6, %v416_v5  ;;  %v1339_v6 = vld [vmem:[%s3176_s8 + $0x28] sm:$0xff] }
  0xb2   : > { %v419_v8 = vrot.slane %v418_v7, 2 }
  0xb4   : > { %v420_v9 = vadd.f32 %v419_v8, %v418_v7  ;;  %v1512_v8 = vld [vmem:[%s3178_s10] sm:$0xff] }
  0xb6   : > { %v421_v10 = vrot.slane %v420_v9, 1 }
  0xb8   : > { %v422_v11 = vadd.f32 %v421_v10, %v420_v9 }
  0xba   : > { %1888 = vpush %v422_v11 }
  0xeb   : > { %s1889_s28 = spop %1888 }
  0xec   : > { %s426_s29 = smul.f32 0.00048828125, %s1889_s28  ;;  %s3183_s28 = smov 112  }
  0xee   : > { %v427_v12 = vstv %s426_s29  ;;  %s3185_s29 = smov 16  }
  0xef   : > { %v428_v13 = vsub.f32 %v412_v0, %v427_v12  ;;  %v429_v14 = vsub.f32 %v413_v1, %v427_v12 }
  0xf1   : > { %v430_v15 = vmul.f32 %v428_v13, %v428_v13  ;;  %v431_v16 = vmul.f32 %v429_v14, %v429_v14 }
  0xf3   : > { %v432_v17 = vadd.f32 %v431_v16, %v430_v15 }
  0xf5   : > { %433 = vadd.xlane.f32.xlu0 %v432_v17 }
 0x182   : > { %v434_v19 = vpop.xlane.xlu0 %433 }
 0x183   : > { %v435_v20 = vrot.slane %v434_v19, 4 }
 0x185   : > { %v436_v21 = vadd.f32 %v435_v20, %v434_v19 }
 0x187   : > { %v437_v22 = vrot.slane %v436_v21, 2 }
 0x189   : > { %v438_v23 = vadd.f32 %v437_v22, %v436_v21 }
 0x18b   : > { %v439_v24 = vrot.slane %v438_v23, 1 }
 0x18d   : > { %v440_v25 = vadd.f32 %v439_v24, %v438_v23 }
 0x18f   : > { %1890 = vpush %v440_v25 }
 0x1c0   : > { %s1891_s17 = spop %1890 }
 0x1c1   : > { %s444_s18 = smul.f32 0.00048828125, %s1891_s17 }
 0x1c3   : > { %s445_s20 = sadd.f32 1e-05, %s444_s18 }
 0x1c5   : > { %v446_v26 = vstv %s445_s20  ;;  %s2214_s20 = smov [#allocation2]  }
 0x1c6   : > { %2132 = vrsqrt.f32 %v446_v26 }
 0x1d0   : > { %v2133_v27 = vpop.eup %2132 }
 0x1d1   : > { %1892 = vpush %v2133_v27 }
 0x202   : > { %s1893_s26 = spop %1892 }
 0x203   : > { %v449_v29 = vstv %s1893_s26  ;;  %s404_s26 = sand.u32 1, %s2198_s22  }
 0x204   : > { %v450_v30 = vmul.f32 %v449_v29, %v428_v13  ;;  %v451_v31 = vmul.f32 %v449_v29, %v429_v14  ;;  %s3126_s18 = scalar_lea.sflag [#allocation3], %s404_s26 }
 0x206   : > { %v458_v32 = vmul.f32 %v456_v28, %v450_v30  ;;  %v459_v33 = vmul.f32 %v456_v28, %v451_v31 }
 0x208   : > { %v466_v35 = vadd.f32 %v464_v34, %v458_v32  ;;  %v467_v36 = vadd.f32 %v464_v34, %v459_v33 }
 0x20a   : > { %v2344_v37 = vmax.f32 %v466_v35, 0.0  ;;  %v2346_v38 = vmax.f32 %v467_v36, 0.0 }
 0x20c   : > { %513 = vrot.lane.b32.xlu1 %v2344_v37, %s3183_s28  ;;  %v1941_v39 = vpack.i.bf16 %v2346_v38, %v2344_v37 }
 0x20e   : > { %1942 = vrot.lane.b32.xlu0 %v1941_v39, %s3185_s29  ;;  %s3205_s29 = smov 1  }
 0x210   : > { %515 = vrot.lane.b32.xlu1 %v2346_v38, %s3183_s28  ;;  %s3204_s28 = smov 112  }
 0x214   : > { %1947 = vrot.lane.b32.xlu1 %v1941_v39, %s3181_s15 }
 0x27e   : > { %v514_v43 = vpop.permute.xlu1 %513 }
 0x280   : > { %v1943_v44 = vpop.permute.xlu0 %1942 }
 0x281   : > { %v1945_v45 = vunpack.i.h.bf16 %v1943_v44  ;;  %v1944_v46 = vunpack.i.l.bf16 %v1943_v44 }
 0x282   : > { %v516_v47 = vpop.permute.xlu1 %515 }
 0x283   : > { %v2366_v48 = vsel %vm497_vm0, %v1944_v46, %v1945_v45  ;;  %v510_v49 = vsel %vm497_vm0, %v1945_v45, %v1944_v46  ;;  %v2372_v50 = vsel %vm517_vm1, %v514_v43, %v516_v47  ;;  %v519_v51 = vsel %vm517_vm1, %v516_v47, %v514_v43 }
 0x284   : > { %v2379_v52 = vsel %vm497_vm0, %v2344_v37, %v510_v49  ;;  %v2384_v53 = vsel %vm500_vm2, %v2346_v38, %v519_v51 }
 0x285   : > { %v1966_v54 = vpack.i.bf16 %v2384_v53, %v2372_v50  ;;  %v1951_v55 = vpack.i.bf16 %v2366_v48, %v2379_v52 }
 0x286   : > { %v1948_v61 = vpop.permute.xlu1 %1947 }
 0x287   : > { %1967 = vrot.lane.b32.xlu0 %v1966_v54, %s3181_s15  ;;  %1952 = vrot.lane.b32.xlu1 %v1951_v55, %s3181_s15  ;;  %v1950_v0 = vunpack.i.h.bf16 %v1948_v61  ;;  %v1949_v1 = vunpack.i.l.bf16 %v1948_v61  ;;  %s1723_s15 = sshll.u32 %s2302_s25, 9 }
 0x289   : > { %v544_v10 = vsel %vm526_vm3, %v1949_v1, %v1950_v0  ;;  %v545_v11 = vsel %vm526_vm3, %v1950_v0, %v1949_v1 }
 0x28a   : > { %v547_v25 = vsel %vm2415_vm5, %v2346_v38, %v544_v10  ;;  %v546_v30 = vsel %vm2423_vm7, %v2344_v37, %v545_v11 }
 0x28b   : > { %566 = vrot.lane.b32.xlu0 %v2384_v53, %s2212_s16  ;;  %1957 = vrot.lane.b32.xlu1 %v1951_v55, %s2212_s16  ;;  %v572_v55 = vld [vmem:[%s3171_s3] sm:$0xff] }
 0x28f   : > { %1962 = vrot.lane.b32.xlu1 %v1941_v39, %s2212_s16  ;;  %587 = vperm.xlu0 %1971, %v577_v60  }
 0x293   : > { %564 = vrot.lane.b32.xlu1 %v2372_v50, %s2212_s16 }
 0x297   : > { %582 = vperm.xlu1 %1940, %v576_v57  }
 0x29b   : > { %592 = vperm.xlu1 %1940, %v578_v58   ;;  %v573_v58 = vld [vmem:[%s3171_s3 + $0x8] sm:$0xff] }
 0x29f   : > { %597 = vperm.xlu1 %1940, %v579_v59  }
 0x2f9   : > { %v1953_v2 = vpop.permute.xlu1 %1952  ;;  %v1968_v3 = vpop.permute.xlu0 %1967 }
 0x2fa   : > { %v1955_v4 = vunpack.i.h.bf16 %v1953_v2  ;;  %v1954_v5 = vunpack.i.l.bf16 %v1953_v2  ;;  %v1970_v14 = vunpack.i.h.bf16 %v1968_v3  ;;  %v1969_v15 = vunpack.i.l.bf16 %v1968_v3 }
 0x2fc   : > { %v527_v12 = vsel %vm526_vm3, %v1954_v5, %v1955_v4  ;;  %v528_v13 = vsel %vm526_vm3, %v1955_v4, %v1954_v5  ;;  %v560_v26 = vsel %vm526_vm3, %v1969_v15, %v1970_v14  ;;  %v561_v39 = vsel %vm526_vm3, %v1970_v14, %v1969_v15 }
 0x2fd   : > { %v1958_v16 = vpop.permute.xlu1 %1957  ;;  %v530_v17 = vsel %vm2415_vm5, %v2366_v48, %v527_v12  ;;  %v529_v18 = vsel %vm2423_vm7, %v2379_v52, %v528_v13  ;;  %v563_v44 = vsel %vm2415_vm5, %v2384_v53, %v560_v26  ;;  %v562_v49 = vsel %vm2423_vm7, %v2372_v50, %v561_v39  ;;  %v567_v51 = vpop.permute.xlu0 %566  ;;  %v743_v39 = vld [vmem:[%s3173_s5] sm:$0xff] }
 0x2fe   : > { %v1960_v19 = vunpack.i.h.bf16 %v1958_v16  ;;  %v1959_v20 = vunpack.i.l.bf16 %v1958_v16  ;;  %v1768_v21 = vpack.c.bf16 %v2366_v48, %v530_v17  ;;  %v1770_v22 = vpack.c.bf16 %v2379_v52, %v529_v18 }
 0x2ff   : > { %v1782_v54 = vpack.c.bf16 %v2372_v50, %v562_v49 }
 0x300   : > { %v536_v23 = vsel %vm535_vm4, %v1959_v20, %v1960_v19  ;;  %v537_v24 = vsel %vm535_vm4, %v1960_v19, %v1959_v20  ;;  %1769 = vmatprep.subr.bf16.mxu1 %v1768_v21 }
 0x301   : > { %v1963_v27 = vpop.permute.xlu1 %1962  ;;  %1771 = vmatpush1.bf16.msra.mxu1 %v1770_v22  ;;  %v539_v28 = vsel %vm2419_vm6, %v2366_v48, %v537_v24  ;;  %v538_v29 = vsel %vm2427_vm8, %v2379_v52, %v536_v23  ;;  %v1780_v48 = vpack.c.bf16 %v2384_v53, %v563_v44  ;;  %v1038_v44 = vld [vmem:[%s3175_s7] sm:$0xff] }
 0x302   : > { %v1965_v31 = vunpack.i.h.bf16 %v1963_v27  ;;  %v1964_v32 = vunpack.i.l.bf16 %v1963_v27  ;;  %v1772_v33 = vpack.c.bf16 %v547_v25, %v539_v28  ;;  %v1774_v34 = vpack.c.bf16 %v546_v30, %v538_v29 }
 0x304   : > { %v552_v35 = vsel %vm535_vm4, %v1964_v32, %v1965_v31  ;;  %v553_v36 = vsel %vm535_vm4, %v1965_v31, %v1964_v32  ;;  %1773 = vmatprep.subr.bf16.mxu1 %v1772_v33 }
 0x305   : > { %1775 = vmatpush1.bf16.msra.mxu1 %v1774_v34  ;;  %v555_v40 = vsel %vm2419_vm6, %v2346_v38, %v553_v36  ;;  %v554_v43 = vsel %vm2427_vm8, %v2344_v37, %v552_v35  ;;  %v565_v47 = vpop.permute.xlu1 %564  ;;  %v1007_v35 = vld [vmem:[%s3174_s6 + $0x8] sm:$0xff] }
 0x306   : > { %v1776_v45 = vpack.c.bf16 %v555_v40, %v2346_v38  ;;  %v1778_v46 = vpack.c.bf16 %v554_v43, %v2344_v37  ;;  %v569_v52 = vsel %vm535_vm4, %v567_v51, %v565_v47  ;;  %v568_v38 = vsel %vm535_vm4, %v565_v47, %v567_v51  ;;  %v1039_v36 = vld [vmem:[%s3175_s7 + $0x8] sm:$0xff]  ;;  %v1009_v40 = vld [vmem:[%s3174_s6 + $0x18] sm:$0xff]  ;;  %v1006_v43 = vld [vmem:[%s3174_s6] sm:$0xff] }
 0x307   : > { %v571_v37 = vsel %vm2419_vm6, %v2384_v53, %v569_v52  ;;  %v570_v57 = vsel %vm2427_vm8, %v2372_v50, %v568_v38  ;;  %v574_v53 = vld [vmem:[%s3171_s3 + $0x10] sm:$0xff]  ;;  %v575_v50 = vld [vmem:[%s3171_s3 + $0x18] sm:$0xff] }
 0x308   : > { %1777 = vmatprep.subr.bf16.mxu1 %v1776_v45  ;;  %v1008_v45 = vld [vmem:[%s3174_s6 + $0x10] sm:$0xff] }
 0x309   : > { %1779 = vmatpush1.bf16.msra.mxu1 %v1778_v46 }
 0x30a   : > { %1781 = vmatprep.subr.bf16.mxu1 %v1780_v48 }
 0x30d   : > { %1783 = vmatpush1.bf16.msra.mxu1 %v1782_v54 }
 0x30e   : > { %629 = vmatprep.subr.mxu1 %v571_v37  ;;  %v588_v0 = vpop.permute.xlu0 %587 }
 0x311   : > { %630 = vmatpush1.msra.mxu1 %v570_v57 }
 0x312   : > { %1701 = vmatmul.mubr.msk.f32.vlgmr.msra.gmra.mrb[0].mxu1 %vm600_vm9, %v572_v55 }
 0x313   : > { %683 = vmatprep.mubr.f32.mxu1 %v2213_v56 }
 0x316   : > { %1702 = vmatmul.mubr.msk.f32.gmra.mrb[2].mxu1 %vm600_vm9, %v573_v58  ;;  %v583_v59 = vpop.permute.xlu1 %582 }
 0x317   : > { %689 = vmatprep.mubr.f32.mxu1 %v2213_v56 }
 0x31a   : > { %1703 = vmatmul.mubr.msk.f32.gmra.mrb[4].mxu1 %vm600_vm9, %v574_v53  ;;  %v593_v5 = vpop.permute.xlu1 %592 }
 0x31b   : > { %695 = vmatprep.mubr.f32.mxu1 %v2213_v56 }
 0x31e   : > { %1704 = vmatmul.mubr.msk.f32.gmra.mrb[6].mxu1 %vm600_vm9, %v575_v50  ;;  %v598_v18 = vpop.permute.xlu1 %597 }
 0x31f   : > { %1748 = vmatprep.mubr.msk.f32.mxu1 %vm747_vm10, %v743_v39 }
 0x3e5   : > { %v679_v60 = vpop.f32.mrb[0].mxu1 }
 0x3e6   : > { %v2512_v61 = vadd.f32 %v679_v60, %v583_v59  ;;  %v681_v62 = vpop.f32.mrb[1].mxu1  ;;  %v744_v60 = vld [vmem:[%s3173_s5 + $0x8] sm:$0xff] }
 0x3e7   : > { %v2514_v63 = vadd.f32 %v681_v62, %v583_v59 }
 0x3e8   : > { %v719_v13 = vmul.f32 %v2512_v61, %v2512_v61 }
 0x3e9   : > { %v685_v1 = vpop.f32.mrb[2].mxu1  ;;  %v702_v2 = vadd.f32 %v2514_v63, %v2512_v61  ;;  %v720_v14 = vmul.f32 %v2514_v63, %v2514_v63 }
 0x3ea   : > { %v2518_v3 = vadd.f32 %v685_v1, %v588_v0  ;;  %v687_v4 = vpop.f32.mrb[3].mxu1 }
 0x3eb   : > { %v2520_v10 = vadd.f32 %v687_v4, %v588_v0  ;;  %703 = vadd.xlane.f32.xlu0 %v702_v2  ;;  %v727_v20 = vadd.f32 %v720_v14, %v719_v13  ;;  %v745_v0 = vld [vmem:[%s3173_s5 + $0x10] sm:$0xff] }
 0x3ec   : > { %v721_v29 = vmul.f32 %v2518_v3, %v2518_v3 }
 0x3ed   : > { %v691_v11 = vpop.f32.mrb[4].mxu1  ;;  %v705_v12 = vadd.f32 %v2520_v10, %v2518_v3  ;;  %v722_v30 = vmul.f32 %v2520_v10, %v2520_v10 }
 0x3ee   : > { %v2528_v15 = vadd.f32 %v691_v11, %v593_v5  ;;  %v693_v16 = vpop.f32.mrb[5].mxu1 }
 0x3ef   : > { %v2530_v17 = vadd.f32 %v693_v16, %v593_v5  ;;  %706 = vadd.xlane.f32.xlu1 %v705_v12  ;;  %v730_v31 = vadd.f32 %v722_v30, %v721_v29  ;;  %v746_v5 = vld [vmem:[%s3173_s5 + $0x18] sm:$0xff] }
 0x3f0   : > { %v723_v22 = vmul.f32 %v2528_v15, %v2528_v15 }
 0x3f1   : > { %v697_v19 = vpop.f32.mrb[6].mxu1  ;;  %v708_v21 = vadd.f32 %v2530_v17, %v2528_v15  ;;  %v724_v23 = vmul.f32 %v2530_v17, %v2530_v17 }
 0x3f2   : > { %v2538_v24 = vadd.f32 %v697_v19, %v598_v18  ;;  %v699_v25 = vpop.f32.mrb[7].mxu1 }
 0x3f3   : > { %v2540_v26 = vadd.f32 %v699_v25, %v598_v18  ;;  %728 = vadd.xlane.f32.xlu1 %v727_v20  ;;  %709 = vadd.xlane.f32.xlu0 %v708_v21  ;;  %v733_v27 = vadd.f32 %v724_v23, %v723_v22 }
 0x3f4   : > { %v725_v32 = vmul.f32 %v2538_v24, %v2538_v24 }
 0x3f5   : > { %v711_v28 = vadd.f32 %v2540_v26, %v2538_v24  ;;  %v726_v33 = vmul.f32 %v2540_v26, %v2540_v26 }
 0x3f7   : > { %734 = vadd.xlane.f32.xlu1 %v733_v27  ;;  %712 = vadd.xlane.f32.xlu0 %v711_v28  ;;  %v736_v34 = vadd.f32 %v726_v33, %v725_v32 }
 0x3fb   : > { %731 = vadd.xlane.f32.xlu0 %v730_v31 }
 0x3ff   : > { %737 = vadd.xlane.f32.xlu0 %v736_v34 }
 0x408   : > { %1017 = vperm.xlu1 %1940, %v1007_v35  }
 0x40c   : > { %1049 = vperm.xlu1 %1940, %v1039_v36  }
 0x410   : > { %1027 = vperm.xlu1 %1940, %v1009_v40  }
 0x415   : > { %1012 = vperm.xlu0 %1971, %v1006_v43  }
 0x419   : > { %1044 = vperm.xlu0 %1971, %v1038_v44  }
 0x41d   : > { %1022 = vperm.xlu0 %1971, %v1008_v45  }
 0x478   : > { %v704_v46 = vpop.xlane.xlu0 %703 }
 0x479   : > { %v715_v48 = vmul.f32 0.00390625, %v704_v46 }
 0x47c   : > { %v707_v47 = vpop.xlane.xlu1 %706 }
 0x47d   : > { %v716_v49 = vmul.f32 0.00390625, %v707_v47  ;;  %v1040_v47 = vld [vmem:[%s3175_s7 + $0x10] sm:$0xff] }
 0x47f   : > { %v1784_v51 = vpack.c.bf16 %v716_v49, %v715_v48  ;;  %v1041_v49 = vld [vmem:[%s3175_s7 + $0x18] sm:$0xff] }
 0x480   : > { %v710_v52 = vpop.xlane.xlu0 %709  ;;  %v729_v54 = vpop.xlane.xlu1 %728 }
 0x481   : > { %1785 = vmatprep.subr.bf16.mxu1 %v1784_v51  ;;  %v717_v37 = vmul.f32 0.00390625, %v710_v52  ;;  %v739_v53 = vmul.f32 0.00390625, %v729_v54 }
 0x482   : > { %1787 = vmatpush3.bf16.msra.mxu1 %v1784_v51 }
 0x484   : > { %v713_v38 = vpop.xlane.xlu0 %712  ;;  %v735_v59 = vpop.xlane.xlu1 %734 }
 0x485   : > { %v718_v55 = vmul.f32 0.00390625, %v713_v38  ;;  %v741_v2 = vmul.f32 0.00390625, %v735_v59 }
 0x487   : > { %v1788_v57 = vpack.c.bf16 %v718_v55, %v717_v37 }
 0x488   : > { %v732_v58 = vpop.xlane.xlu0 %731  ;;  %v1018_v51 = vpop.permute.xlu1 %1017 }
 0x489   : > { %v740_v50 = vmul.f32 0.00390625, %v732_v58  ;;  %1789 = vmatprep.subr.bf16.mxu1 %v1788_v57 }
 0x48a   : > { %1791 = vmatpush3.bf16.msra.mxu1 %v1788_v57 }
 0x48b   : > { %v1792_v62 = vpack.c.bf16 %v740_v50, %v739_v53 }
 0x48c   : > { %v738_v1 = vpop.xlane.xlu0 %737  ;;  %v1050_v54 = vpop.permute.xlu1 %1049 }
 0x48d   : > { %v742_v4 = vmul.f32 0.00390625, %v738_v1  ;;  %1749 = vmatmul.mubr.msk.f32.vlgmr.msra.gmra.mrb[8].mxu1 %vm747_vm10, %v744_v60  ;;  %1793 = vmatprep.subr.bf16.mxu1 %v1792_v62 }
 0x48e   : > { %1795 = vmatpush3.bf16.msra.mxu1 %v1792_v62  ;;  %1751 = vmatprep.mubr.msk.f32.mxu1 %vm747_vm10, %v745_v0 }
 0x48f   : > { %v1796_v11 = vpack.c.bf16 %v742_v4, %v741_v2 }
 0x490   : > { %v1028_v37 = vpop.permute.xlu1 %1027 }
 0x491   : > { %1752 = vmatmul.mubr.msk.f32.gmra.mrb[10].mxu1 %vm747_vm10, %v746_v5  ;;  %1797 = vmatprep.subr.bf16.mxu1 %v1796_v11 }
 0x492   : > { %1799 = vmatpush3.bf16.msra.mxu1 %v1796_v11  ;;  %1762 = vmatprep.mubr.msk.f32.mxu1 %vm747_vm10, %v743_v39 }
 0x494   : > { %v1013_v52 = vpop.permute.xlu0 %1012 }
 0x495   : > { %1763 = vmatmul.mubr.msk.f32.vlgmr.msra.gmra.mrb[12].mxu1 %vm747_vm10, %v744_v60 }
 0x496   : > { %1765 = vmatprep.mubr.msk.f32.mxu1 %vm747_vm10, %v745_v0 }
 0x498   : > { %v1045_v38 = vpop.permute.xlu0 %1044 }
 0x499   : > { %1766 = vmatmul.mubr.msk.f32.gmra.mrb[14].mxu1 %vm747_vm10, %v746_v5 }
 0x49a   : > { %1499 = vmatprep.mubr.f32.mxu1 %v2213_v56 }
 0x49c   : > { %v1023_v57 = vpop.permute.xlu0 %1022 }
 0x560   : > { %v1750_v12 = vpop.f32.mrb[8].mxu1 }
 0x561   : > { %949 = vperm.xlu0 %1971, %v1750_v12   ;;  %v826_v13 = vpop.f32.mrb[9].mxu1  ;;  %v931_v18 = vmul.f32 %v1750_v12, %v1750_v12 }
 0x562   : > { %944 = vperm.xlu1 %1940, %v826_v13   ;;  %v930_v19 = vmul.f32 %v826_v13, %v826_v13 }
 0x564   : > { %v1753_v14 = vpop.f32.mrb[10].mxu1 }
 0x565   : > { %v836_v16 = vpop.f32.mrb[11].mxu1  ;;  %v933_v25 = vmul.f32 %v1753_v14, %v1753_v14 }
 0x566   : > { %959 = vperm.xlu1 %1940, %v1753_v14   ;;  %954 = vperm.xlu0 %1971, %v836_v16   ;;  %v932_v28 = vmul.f32 %v836_v16, %v836_v16 }
 0x568   : > { %v1764_v20 = vpop.f32.mrb[12].mxu1 }
 0x569   : > { %v935_v21 = vsub.f32 %v1764_v20, %v931_v18  ;;  %v911_v22 = vpop.f32.mrb[13].mxu1 }
 0x56a   : > { %v934_v23 = vsub.f32 %v911_v22, %v930_v19 }
 0x56b   : > { %v939_v27 = vmax.f32 %v935_v21, 0.0 }
 0x56c   : > { %v938_v29 = vmax.f32 %v934_v23, 0.0  ;;  %v1767_v30 = vpop.f32.mrb[14].mxu1 }
 0x56d   : > { %v971_v31 = vadd.f32 1e-05, %v939_v27  ;;  %v937_v32 = vsub.f32 %v1767_v30, %v933_v25  ;;  %v921_v33 = vpop.f32.mrb[15].mxu1 }
 0x56e   : > { %v936_v34 = vsub.f32 %v921_v33, %v932_v28  ;;  %v970_v35 = vadd.f32 1e-05, %v938_v29 }
 0x56f   : > { %2134 = vrsqrt.f32 %v971_v31  ;;  %v941_v36 = vmax.f32 %v937_v32, 0.0 }
 0x570   : > { %v940_v39 = vmax.f32 %v936_v34, 0.0  ;;  %2136 = vrsqrt.f32 %v970_v35 }
 0x571   : > { %v973_v43 = vadd.f32 1e-05, %v941_v36 }
 0x572   : > { %v972_v40 = vadd.f32 1e-05, %v940_v39 }
 0x574   : > { %2138 = vrsqrt.f32 %v972_v40 }
 0x575   : > { %2140 = vrsqrt.f32 %v973_v43 }
 0x579   : > { %v2135_v44 = vpop.eup %2134 }
 0x57a   : > { %985 = vperm.xlu1 %1940, %v2135_v44   ;;  %v2137_v45 = vpop.eup %2136 }
 0x57e   : > { %v2139_v46 = vpop.eup %2138  ;;  %980 = vperm.xlu1 %1940, %v2137_v45  }
 0x57f   : > { %990 = vperm.xlu0 %1971, %v2139_v46   ;;  %v2141_v48 = vpop.eup %2140 }
 0x582   : > { %995 = vperm.xlu1 %1940, %v2141_v48  }
 0x583   : > { %1054 = vperm.xlu0 %1971, %v1040_v47  }
 0x586   : > { %1059 = vperm.xlu1 %1940, %v1041_v49  }
 0x5e0   : > { %v950_v58 = vpop.permute.xlu0 %949 }
 0x5e1   : > { %v945_v55 = vpop.permute.xlu1 %944  ;;  %v964_v50 = vsub.f32 %v2518_v3, %v950_v58  ;;  %v965_v59 = vsub.f32 %v2520_v10, %v950_v58 }
 0x5e2   : > { %v962_v2 = vsub.f32 %v2512_v61, %v945_v55  ;;  %v963_v4 = vsub.f32 %v2514_v63, %v945_v55 }
 0x5e5   : > { %v960_v53 = vpop.permute.xlu1 %959  ;;  %v955_v62 = vpop.permute.xlu0 %954 }
 0x5e6   : > { %v966_v12 = vsub.f32 %v2528_v15, %v955_v62  ;;  %v967_v13 = vsub.f32 %v2530_v17, %v955_v62  ;;  %v968_v22 = vsub.f32 %v2538_v24, %v960_v53  ;;  %v969_v61 = vsub.f32 %v2540_v26, %v960_v53 }
 0x5f9   : > { %v986_v60 = vpop.permute.xlu1 %985 }
 0x5fa   : > { %v1000_v0 = vmul.f32 %v986_v60, %v964_v50  ;;  %v1001_v1 = vmul.f32 %v986_v60, %v965_v59 }
 0x5fc   : > { %v1032_v5 = vmul.f32 %v1018_v51, %v1000_v0  ;;  %v1033_v11 = vmul.f32 %v1018_v51, %v1001_v1 }
 0x5fd   : > { %v981_v14 = vpop.permute.xlu1 %980 }
 0x5fe   : > { %v998_v16 = vmul.f32 %v981_v14, %v962_v2  ;;  %v999_v18 = vmul.f32 %v981_v14, %v963_v4  ;;  %v991_v3 = vpop.permute.xlu0 %990  ;;  %v1064_v19 = vadd.f32 %v1050_v54, %v1032_v5  ;;  %v1065_v10 = vadd.f32 %v1050_v54, %v1033_v11 }
 0x5ff   : > { %v1002_v20 = vmul.f32 %v991_v3, %v966_v12  ;;  %v1003_v21 = vmul.f32 %v991_v3, %v967_v13 }
 0x600   : > { %v1030_v23 = vmul.f32 %v1013_v52, %v998_v16  ;;  %v1031_v63 = vmul.f32 %v1013_v52, %v999_v18  ;;  %v2605_v32 = vmax.f32 %v1064_v19, 0.0  ;;  %v2607_v33 = vmax.f32 %v1065_v10, 0.0 }
 0x601   : > { %v996_v25 = vpop.permute.xlu1 %995  ;;  %v1034_v27 = vmul.f32 %v1023_v57, %v1002_v20  ;;  %v1035_v28 = vmul.f32 %v1023_v57, %v1003_v21 }
 0x602   : > { %v1062_v15 = vadd.f32 %v1045_v38, %v1030_v23  ;;  %v1063_v29 = vadd.f32 %v1045_v38, %v1031_v63  ;;  %v1004_v17 = vmul.f32 %v996_v25, %v968_v22  ;;  %v1005_v30 = vmul.f32 %v996_v25, %v969_v61  ;;  %v1055_v31 = vpop.permute.xlu0 %1054 }
 0x603   : > { %v1066_v34 = vadd.f32 %v1055_v31, %v1034_v27  ;;  %v1067_v35 = vadd.f32 %v1055_v31, %v1035_v28 }
 0x604   : > { %v2609_v36 = vmax.f32 %v1062_v15, 0.0  ;;  %v2611_v24 = vmax.f32 %v1063_v29, 0.0  ;;  %v1036_v26 = vmul.f32 %v1028_v37, %v1004_v17  ;;  %v1037_v39 = vmul.f32 %v1028_v37, %v1005_v30 }
 0x605   : > { %v1060_v40 = vpop.permute.xlu1 %1059  ;;  %v2621_v47 = vmax.f32 %v1066_v34, 0.0  ;;  %v2623_v48 = vmax.f32 %v1067_v35, 0.0 }
 0x606   : > { %v1068_v43 = vadd.f32 %v1060_v40, %v1036_v26  ;;  %v1069_v44 = vadd.f32 %v1060_v40, %v1037_v39  ;;  %v2615_v45 = vpack.i.bf16 %v2607_v33, %v2611_v24  ;;  %v2619_v46 = vpack.i.bf16 %v2605_v32, %v2609_v36 }
 0x608   : > { %v2625_v49 = vmax.f32 %v1068_v43, 0.0  ;;  %v2627_v51 = vmax.f32 %v1069_v44, 0.0  ;;  %1978 = vrot.lane.b32.xlu1 %v2615_v45, %s3203_s0  ;;  %1973 = vrot.lane.b32.xlu0 %v2619_v46, %s3203_s0 }
 0x60a   : > { %v2635_v52 = vpack.i.bf16 %v2627_v51, %v2623_v48  ;;  %v2639_v54 = vpack.i.bf16 %v2625_v49, %v2621_v47 }
 0x60c   : > { %1988 = vrot.lane.b32.xlu1 %v2635_v52, %s3203_s0  ;;  %1983 = vrot.lane.b32.xlu0 %v2639_v54, %s3203_s0 }
 0x610   : > { %1998 = vrot.lane.b32.xlu1 %v2615_v45, %s3204_s28  ;;  %1993 = vrot.lane.b32.xlu0 %v2619_v46, %s3204_s28 }
 0x614   : > { %2008 = vrot.lane.b32.xlu1 %v2635_v52, %s3204_s28  ;;  %2003 = vrot.lane.b32.xlu0 %v2639_v54, %s3204_s28  ;;  %s1698_s28 = sshll.u32 %s404_s26, 5 }
 0x67a   : > { %v1979_v38 = vpop.permute.xlu1 %1978  ;;  %v1974_v37 = vpop.permute.xlu0 %1973 }
 0x67b   : > { %v1981_v55 = vunpack.i.h.bf16 %v1979_v38  ;;  %v1980_v57 = vunpack.i.l.bf16 %v1979_v38  ;;  %v1976_v58 = vunpack.i.h.bf16 %v1974_v37  ;;  %v1975_v53 = vunpack.i.l.bf16 %v1974_v37 }
 0x67d   : > { %v2655_v50 = vsel %vm497_vm0, %v1976_v58, %v1981_v55  ;;  %v1099_v59 = vsel %vm497_vm0, %v1981_v55, %v1976_v58  ;;  %v2661_v60 = vsel %vm497_vm0, %v1975_v53, %v1980_v57  ;;  %v1098_v62 = vsel %vm497_vm0, %v1980_v57, %v1975_v53 }
 0x67e   : > { %v2668_v0 = vsel %vm497_vm0, %v2605_v32, %v1099_v59  ;;  %v2673_v1 = vsel %vm497_vm0, %v2609_v36, %v1098_v62  ;;  %v1989_v2 = vpop.permute.xlu1 %1988  ;;  %v1984_v4 = vpop.permute.xlu0 %1983  ;;  %v2012_v5 = vpack.i.bf16 %v2655_v50, %v2661_v60  ;;  %v1340_v62 = vld [vmem:[%s3177_s9] sm:$0xff] }
 0x67f   : > { %v1991_v11 = vunpack.i.h.bf16 %v1989_v2  ;;  %v1990_v12 = vunpack.i.l.bf16 %v1989_v2  ;;  %v1986_v13 = vunpack.i.h.bf16 %v1984_v4  ;;  %v1985_v14 = vunpack.i.l.bf16 %v1984_v4  ;;  %v1515_v2 = vld [vmem:[%s3179_s11 + $0x8] sm:$0xff]  ;;  %v1514_v4 = vld [vmem:[%s3179_s11] sm:$0xff] }
 0x680   : > { %2013 = vrot.lane.b32.xlu1 %v2012_v5, %s3205_s29  ;;  %v2017_v16 = vpack.i.bf16 %v2668_v0, %v2673_v1 }
 0x681   : > { %v2682_v18 = vsel %vm497_vm0, %v1986_v13, %v1991_v11  ;;  %v1101_v3 = vsel %vm497_vm0, %v1991_v11, %v1986_v13  ;;  %v2688_v19 = vsel %vm497_vm0, %v1985_v14, %v1990_v12  ;;  %v1100_v10 = vsel %vm497_vm0, %v1990_v12, %v1985_v14 }
 0x682   : > { %v2695_v20 = vsel %vm497_vm0, %v2625_v49, %v1101_v3  ;;  %v2700_v21 = vsel %vm497_vm0, %v2621_v47, %v1100_v10  ;;  %2018 = vrot.lane.b32.xlu0 %v2017_v16, %s3205_s29  ;;  %v2027_v22 = vpack.i.bf16 %v2682_v18, %v2688_v19  ;;  %v1999_v23 = vpop.permute.xlu1 %1998  ;;  %v1994_v63 = vpop.permute.xlu0 %1993 }
 0x683   : > { %v2022_v61 = vpack.i.bf16 %v2695_v20, %v2700_v21  ;;  %v2001_v25 = vunpack.i.h.bf16 %v1999_v23  ;;  %v2000_v27 = vunpack.i.l.bf16 %v1999_v23  ;;  %v1996_v28 = vunpack.i.h.bf16 %v1994_v63 }
 0x684   : > { %2028 = vrot.lane.b32.xlu1 %v2027_v22, %s3205_s29  ;;  %v1995_v15 = vunpack.i.l.bf16 %v1994_v63 }
 0x685   : > { %v1131_v29 = vsel %vm517_vm1, %v2001_v25, %v1996_v28  ;;  %v2743_v44 = vsel %vm517_vm1, %v1996_v28, %v2001_v25 }
 0x686   : > { %2023 = vrot.lane.b32.xlu0 %v2022_v61, %s3205_s29  ;;  %v1130_v17 = vsel %vm517_vm1, %v2000_v27, %v1995_v15  ;;  %v2009_v30 = vpop.permute.xlu1 %2008  ;;  %v2004_v31 = vpop.permute.xlu0 %2003  ;;  %v2732_v34 = vsel %vm500_vm2, %v2607_v33, %v1131_v29 }
 0x687   : > { %v2737_v35 = vsel %vm500_vm2, %v2611_v24, %v1130_v17  ;;  %v2011_v26 = vunpack.i.h.bf16 %v2009_v30  ;;  %v2010_v39 = vunpack.i.l.bf16 %v2009_v30  ;;  %v2006_v40 = vunpack.i.h.bf16 %v2004_v31 }
 0x688   : > { %2038 = vrot.lane.b32.xlu1 %v2012_v5, %s2212_s16  ;;  %v2005_v43 = vunpack.i.l.bf16 %v2004_v31  ;;  %v1335_v5 = vld [vmem:[%s3176_s8 + $0x8] sm:$0xff] }
 0x689   : > { %v1133_v38 = vsel %vm517_vm1, %v2011_v26, %v2006_v40  ;;  %v2762_v55 = vsel %vm517_vm1, %v2006_v40, %v2011_v26  ;;  %1422 = vmatprep.mubr.f32.mxu0 %v1335_v5 }
 0x68a   : > { %2033 = vrot.lane.b32.xlu0 %v2017_v16, %s2212_s16  ;;  %v2772_v57 = vsel %vm500_vm2, %v2627_v51, %v1133_v38 }
 0x68c   : > { %2043 = vrot.lane.b32.xlu1 %v2027_v22, %s2212_s16 }
 0x68e   : > { %2048 = vrot.lane.b32.xlu0 %v2022_v61, %s2212_s16 }
 0x690   : > { %2058 = vrot.lane.b32.xlu1 %v2615_v45, %s3205_s29 }
 0x692   : > { %2053 = vrot.lane.b32.xlu0 %v2619_v46, %s3205_s29 }
 0x694   : > { %2068 = vrot.lane.b32.xlu1 %v2635_v52, %s3205_s29 }
 0x696   : > { %2063 = vrot.lane.b32.xlu0 %v2639_v54, %s3205_s29 }
 0x698   : > { %2078 = vrot.lane.b32.xlu1 %v2615_v45, %s2212_s16  ;;  %v2747_v45 = vsel %vm517_vm1, %v1995_v15, %v2000_v27 }
 0x699   : > { %v2092_v37 = vpack.i.bf16 %v2743_v44, %v2747_v45 }
 0x69a   : > { %2073 = vrot.lane.b32.xlu0 %v2619_v46, %s2212_s16  ;;  %v2097_v46 = vpack.i.bf16 %v2732_v34, %v2737_v35 }
 0x69c   : > { %2088 = vrot.lane.b32.xlu1 %v2635_v52, %s2212_s16  ;;  %v1132_v52 = vsel %vm517_vm1, %v2010_v39, %v2005_v43 }
 0x69d   : > { %v2777_v58 = vsel %vm500_vm2, %v2623_v48, %v1132_v52 }
 0x69e   : > { %2083 = vrot.lane.b32.xlu0 %v2639_v54, %s2212_s16  ;;  %v2766_v54 = vsel %vm517_vm1, %v2005_v43, %v2010_v39  ;;  %v2122_v59 = vpack.i.bf16 %v2772_v57, %v2777_v58 }
 0x69f   : > { %v2102_v53 = vpack.i.bf16 %v2762_v55, %v2766_v54 }
 0x6a0   : > { %2098 = vrot.lane.b32.xlu1 %v2097_v46, %s3205_s29 }
 0x6a2   : > { %2093 = vrot.lane.b32.xlu0 %v2092_v37, %s3205_s29 }
 0x6a4   : > { %2113 = vrot.lane.b32.xlu1 %v2097_v46, %s2212_s16 }
 0x6a6   : > { %2103 = vrot.lane.b32.xlu0 %v2102_v53, %s3205_s29 }
 0x6a8   : > { %2123 = vrot.lane.b32.xlu1 %v2122_v59, %s3205_s29 }
 0x6aa   : > { %2108 = vrot.lane.b32.xlu0 %v2092_v37, %s2212_s16 }
 0x6ac   : > { %2128 = vrot.lane.b32.xlu1 %v2122_v59, %s2212_s16 }
 0x6ae   : > { %2118 = vrot.lane.b32.xlu0 %v2102_v53, %s2212_s16  ;;  %s3122_s16 = scalar_lea.hbm %s3180_s12, %s1723_s15 }
 0x6b0   : > { %1349 = vperm.xlu1 %1940, %v1341_v42  }
 0x6b2   : > { %1344 = vperm.xlu0 %1971, %v1340_v62  }
 0x6b4   : > { %1523 = vperm.xlu1 %1940, %v1515_v2  }
 0x6b6   : > { %1518 = vperm.xlu0 %1971, %v1514_v4  }
 0x6f2   : > { %v2014_v11 = vpop.permute.xlu1 %2013 }
 0x6f3   : > { %v2016_v12 = vunpack.i.h.bf16 %v2014_v11  ;;  %v2015_v13 = vunpack.i.l.bf16 %v2014_v11 }
 0x6f4   : > { %v2019_v14 = vpop.permute.xlu0 %2018 }
 0x6f5   : > { %v2021_v16 = vunpack.i.h.bf16 %v2019_v14  ;;  %v2020_v3 = vunpack.i.l.bf16 %v2019_v14 }
 0x6f6   : > { %v2029_v10 = vpop.permute.xlu1 %2028 }
 0x6f7   : > { %v2031_v22 = vunpack.i.h.bf16 %v2029_v10  ;;  %v2030_v61 = vunpack.i.l.bf16 %v2029_v10  ;;  %v1158_v23 = vsel %vm526_vm3, %v2020_v3, %v2015_v13  ;;  %v1159_v63 = vsel %vm526_vm3, %v2021_v16, %v2016_v12 }
 0x6f8   : > { %v2024_v25 = vpop.permute.xlu0 %2023  ;;  %v1167_v27 = vsel %vm2415_vm5, %v2661_v60, %v1158_v23  ;;  %v1169_v28 = vsel %vm2415_vm5, %v2655_v50, %v1159_v63  ;;  %v1162_v15 = vsel %vm526_vm3, %v2015_v13, %v2020_v3  ;;  %v1163_v29 = vsel %vm526_vm3, %v2016_v12, %v2021_v16 }
 0x6f9   : > { %v2026_v17 = vunpack.i.h.bf16 %v2024_v25  ;;  %v2025_v30 = vunpack.i.l.bf16 %v2024_v25  ;;  %v1800_v31 = vpack.c.bf16 %v1169_v28, %v1167_v27  ;;  %v1166_v26 = vsel %vm2423_vm7, %v2673_v1, %v1162_v15 }
 0x6fa   : > { %v2039_v39 = vpop.permute.xlu1 %2038  ;;  %v1168_v40 = vsel %vm2423_vm7, %v2668_v0, %v1163_v29  ;;  %v1810_v29 = vpack.c.bf16 %v2668_v0, %v2673_v1 }
 0x6fb   : > { %v1160_v43 = vsel %vm526_vm3, %v2025_v30, %v2030_v61  ;;  %v1161_v46 = vsel %vm526_vm3, %v2026_v17, %v2031_v22  ;;  %v1164_v38 = vsel %vm526_vm3, %v2030_v61, %v2025_v30  ;;  %v1165_v52 = vsel %vm526_vm3, %v2031_v22, %v2026_v17  ;;  %1801 = vmatprep.subr.bf16.mxu0 %v1800_v31 }
 0x6fc   : > { %v2041_v37 = vunpack.i.h.bf16 %v2039_v39  ;;  %v2040_v53 = vunpack.i.l.bf16 %v2039_v39  ;;  %v2034_v59 = vpop.permute.xlu0 %2033  ;;  %v1802_v42 = vpack.c.bf16 %v1168_v40, %v1166_v26  ;;  %v1171_v62 = vsel %vm2415_vm5, %v2688_v19, %v1160_v43 }
 0x6fd   : > { %v2036_v2 = vunpack.i.h.bf16 %v2034_v59  ;;  %v2035_v4 = vunpack.i.l.bf16 %v2034_v59  ;;  %v1173_v5 = vsel %vm2415_vm5, %v2682_v18, %v1161_v46  ;;  %v1170_v11 = vsel %vm2423_vm7, %v2700_v21, %v1164_v38 }
 0x6fe   : > { %1803 = vmatpush1.bf16.msra.mxu0 %v1802_v42  ;;  %v2044_v12 = vpop.permute.xlu1 %2043  ;;  %v1804_v13 = vpack.c.bf16 %v1173_v5, %v1171_v62  ;;  %v1172_v14 = vsel %vm2423_vm7, %v2695_v20, %v1165_v52  ;;  %v1808_v61 = vpack.c.bf16 %v2655_v50, %v2661_v60  ;;  %v1812_v17 = vpack.c.bf16 %v2682_v18, %v2688_v19 }
 0x6ff   : > { %v1806_v3 = vpack.c.bf16 %v1172_v14, %v1170_v11  ;;  %v1194_v10 = vsel %vm535_vm4, %v2040_v53, %v2035_v4  ;;  %v1195_v22 = vsel %vm535_vm4, %v2041_v37, %v2036_v2  ;;  %v2046_v23 = vunpack.i.h.bf16 %v2044_v12 }
 0x700   : > { %1805 = vmatprep.subr.bf16.mxu0 %v1804_v13  ;;  %v2049_v16 = vpop.permute.xlu0 %2048  ;;  %v2045_v63 = vunpack.i.l.bf16 %v2044_v12  ;;  %v1190_v30 = vsel %vm535_vm4, %v2035_v4, %v2040_v53  ;;  %v1191_v31 = vsel %vm535_vm4, %v2036_v2, %v2041_v37  ;;  %v1199_v26 = vsel %vm2419_vm6, %v2661_v60, %v1194_v10 }
 0x701   : > { %v2051_v25 = vunpack.i.h.bf16 %v2049_v16  ;;  %v2050_v27 = vunpack.i.l.bf16 %v2049_v16  ;;  %v1201_v39 = vsel %vm2419_vm6, %v2655_v50, %v1195_v22  ;;  %v1814_v60 = vpack.c.bf16 %v2695_v20, %v2700_v21 }
 0x702   : > { %1807 = vmatpush1.bf16.msra.mxu0 %v1806_v3  ;;  %v2059_v28 = vpop.permute.xlu1 %2058  ;;  %v1816_v42 = vpack.c.bf16 %v1201_v39, %v1199_v26  ;;  %v1198_v50 = vsel %vm2427_vm8, %v2673_v1, %v1190_v30  ;;  %v1200_v62 = vsel %vm2427_vm8, %v2668_v0, %v1191_v31 }
 0x703   : > { %1809 = vmatprep.subr.bf16.mxu0 %v1808_v61  ;;  %v1196_v40 = vsel %vm535_vm4, %v2045_v63, %v2050_v27  ;;  %v1197_v43 = vsel %vm535_vm4, %v2046_v23, %v2051_v25  ;;  %v2061_v38 = vunpack.i.h.bf16 %v2059_v28  ;;  %v2060_v52 = vunpack.i.l.bf16 %v2059_v28 }
 0x704   : > { %v2054_v15 = vpop.permute.xlu0 %2053  ;;  %v1192_v2 = vsel %vm535_vm4, %v2050_v27, %v2045_v63  ;;  %v1193_v4 = vsel %vm535_vm4, %v2051_v25, %v2046_v23  ;;  %v1203_v5 = vsel %vm2419_vm6, %v2688_v19, %v1196_v40  ;;  %v1205_v11 = vsel %vm2419_vm6, %v2682_v18, %v1197_v43 }
 0x705   : > { %v2056_v53 = vunpack.i.h.bf16 %v2054_v15  ;;  %v2055_v37 = vunpack.i.l.bf16 %v2054_v15  ;;  %v1818_v10 = vpack.c.bf16 %v1200_v62, %v1198_v50  ;;  %v1202_v61 = vsel %vm2427_vm8, %v2700_v21, %v1192_v2 }
 0x706   : > { %1811 = vmatpush1.bf16.msra.mxu0 %v1810_v29  ;;  %v2069_v46 = vpop.permute.xlu1 %2068  ;;  %v1204_v23 = vsel %vm2427_vm8, %v2695_v20, %v1193_v4  ;;  %v1820_v63 = vpack.c.bf16 %v1205_v11, %v1203_v5 }
 0x707   : > { %1813 = vmatprep.subr.bf16.mxu0 %v1812_v17  ;;  %v2071_v12 = vunpack.i.h.bf16 %v2069_v46  ;;  %v2070_v1 = vunpack.i.l.bf16 %v2069_v46  ;;  %v1222_v16 = vsel %vm526_vm3, %v2055_v37, %v2060_v52  ;;  %v1223_v3 = vsel %vm526_vm3, %v2056_v53, %v2061_v38 }
 0x708   : > { %v2064_v59 = vpop.permute.xlu0 %2063  ;;  %v1226_v19 = vsel %vm526_vm3, %v2060_v52, %v2055_v37  ;;  %v1227_v18 = vsel %vm526_vm3, %v2061_v38, %v2056_v53  ;;  %v1231_v15 = vsel %vm2415_vm5, %v2611_v24, %v1222_v16  ;;  %v1233_v21 = vsel %vm2415_vm5, %v2607_v33, %v1223_v3 }
 0x709   : > { %v2066_v13 = vunpack.i.h.bf16 %v2064_v59  ;;  %v2065_v14 = vunpack.i.l.bf16 %v2064_v59  ;;  %v1822_v29 = vpack.c.bf16 %v1204_v23, %v1202_v61  ;;  %v1230_v17 = vsel %vm2423_vm7, %v2609_v36, %v1226_v19 }
 0x70a   : > { %1815 = vmatpush1.bf16.msra.mxu0 %v1814_v60  ;;  %v2079_v0 = vpop.permute.xlu1 %2078  ;;  %v1232_v30 = vsel %vm2423_vm7, %v2605_v32, %v1227_v18  ;;  %v1824_v38 = vpack.c.bf16 %v1233_v21, %v1231_v15 }
 0x70b   : > { %1817 = vmatprep.subr.bf16.mxu0 %v1816_v42  ;;  %v1224_v25 = vsel %vm526_vm3, %v2065_v14, %v2070_v1  ;;  %v1225_v27 = vsel %vm526_vm3, %v2066_v13, %v2071_v12  ;;  %v1228_v20 = vsel %vm526_vm3, %v2070_v1, %v2065_v14  ;;  %v2081_v31 = vunpack.i.h.bf16 %v2079_v0 }
 0x70c   : > { %v2074_v22 = vpop.permute.xlu0 %2073  ;;  %v2080_v26 = vunpack.i.l.bf16 %v2079_v0  ;;  %v1229_v46 = vsel %vm526_vm3, %v2071_v12, %v2066_v13  ;;  %v1235_v52 = vsel %vm2415_vm5, %v2623_v48, %v1224_v25  ;;  %v1237_v53 = vsel %vm2415_vm5, %v2627_v51, %v1225_v27 }
 0x70d   : > { %v2076_v39 = vunpack.i.h.bf16 %v2074_v22  ;;  %v2075_v40 = vunpack.i.l.bf16 %v2074_v22  ;;  %v1826_v62 = vpack.c.bf16 %v1232_v30, %v1230_v17  ;;  %v1234_v2 = vsel %vm2423_vm7, %v2621_v47, %v1228_v20 }
 0x70e   : > { %1819 = vmatpush1.bf16.msra.mxu0 %v1818_v10  ;;  %v2089_v28 = vpop.permute.xlu1 %2088  ;;  %v1236_v1 = vsel %vm2423_vm7, %v2625_v49, %v1229_v46  ;;  %v1828_v14 = vpack.c.bf16 %v1237_v53, %v1235_v52  ;;  %v1832_v10 = vpack.c.bf16 %v2607_v33, %v2611_v24  ;;  %v1834_v17 = vpack.c.bf16 %v2605_v32, %v2609_v36 }
 0x70f   : > { %1821 = vmatprep.subr.bf16.mxu0 %v1820_v63  ;;  %v2091_v37 = vunpack.i.h.bf16 %v2089_v28  ;;  %v2090_v59 = vunpack.i.l.bf16 %v2089_v28  ;;  %v1254_v4 = vsel %vm535_vm4, %v2075_v40, %v2080_v26  ;;  %v1258_v5 = vsel %vm535_vm4, %v2080_v26, %v2075_v40 }
 0x710   : > { %v2084_v43 = vpop.permute.xlu0 %2083  ;;  %v1259_v11 = vsel %vm535_vm4, %v2081_v31, %v2076_v39  ;;  %v1255_v13 = vsel %vm535_vm4, %v2076_v39, %v2081_v31  ;;  %v1830_v19 = vpack.c.bf16 %v1236_v1, %v1234_v2  ;;  %v1263_v18 = vsel %vm2419_vm6, %v2611_v24, %v1258_v5 }
 0x711   : > { %v2086_v60 = vunpack.i.h.bf16 %v2084_v43  ;;  %v2085_v42 = vunpack.i.l.bf16 %v2084_v43  ;;  %v1265_v22 = vsel %vm2419_vm6, %v2607_v33, %v1259_v11  ;;  %v1262_v61 = vsel %vm2427_vm8, %v2609_v36, %v1254_v4 }
 0x712   : > { %1823 = vmatpush1.bf16.msra.mxu0 %v1822_v29  ;;  %v2099_v50 = vpop.permute.xlu1 %2098  ;;  %v1264_v24 = vsel %vm2427_vm8, %v2605_v32, %v1255_v13  ;;  %v1836_v30 = vpack.c.bf16 %v2627_v51, %v2623_v48  ;;  %v1838_v31 = vpack.c.bf16 %v2625_v49, %v2621_v47  ;;  %v1840_v39 = vpack.c.bf16 %v1265_v22, %v1263_v18 }
 0x713   : > { %1825 = vmatprep.subr.bf16.mxu0 %v1824_v38  ;;  %v1260_v0 = vsel %vm535_vm4, %v2090_v59, %v2085_v42  ;;  %v1261_v16 = vsel %vm535_vm4, %v2091_v37, %v2086_v60  ;;  %v2957_v23 = vsel %vm535_vm4, %v2085_v42, %v2090_v59  ;;  %v2101_v63 = vunpack.i.h.bf16 %v2099_v50 }
 0x714   : > { %v2094_v12 = vpop.permute.xlu0 %2093  ;;  %v2100_v25 = vunpack.i.l.bf16 %v2099_v50  ;;  %v1267_v33 = vsel %vm2419_vm6, %v2623_v48, %v1260_v0  ;;  %v1269_v21 = vsel %vm2419_vm6, %v2627_v51, %v1261_v16  ;;  %v2972_v20 = vsel %vm535_vm4, %v2086_v60, %v2091_v37 }
 0x715   : > { %v2096_v28 = vunpack.i.h.bf16 %v2094_v12  ;;  %v2095_v15 = vunpack.i.l.bf16 %v2094_v12  ;;  %v1842_v40 = vpack.c.bf16 %v1264_v24, %v1262_v61  ;;  %v1844_v43 = vpack.c.bf16 %v1269_v21, %v1267_v33 }
 0x716   : > { %1827 = vmatpush1.bf16.msra.mxu0 %v1826_v62  ;;  %v2114_v3 = vpop.permute.xlu1 %2113  ;;  %v1266_v46 = vsel %vm2427_vm8, %v2621_v47, %v2957_v23  ;;  %v1268_v48 = vsel %vm2427_vm8, %v2625_v49, %v2972_v20 }
 0x717   : > { %1829 = vmatprep.subr.bf16.mxu0 %v1828_v14  ;;  %v1286_v38 = vsel %vm526_vm3, %v2095_v15, %v2100_v25  ;;  %v1287_v32 = vsel %vm526_vm3, %v2096_v28, %v2101_v63  ;;  %v2992_v36 = vsel %vm526_vm3, %v2100_v25, %v2095_v15  ;;  %v2116_v51 = vunpack.i.h.bf16 %v2114_v3 }
 0x718   : > { %v2959_v27 = vpop.permute.xlu0 %2103  ;;  %v2115_v52 = vunpack.i.l.bf16 %v2114_v3  ;;  %v1291_v59 = vsel %vm526_vm3, %v2101_v63, %v2096_v28  ;;  %v1295_v7 = vsel %vm2415_vm5, %v2737_v35, %v1286_v38  ;;  %v1297_v20 = vsel %vm2415_vm5, %v2732_v34, %v1287_v32  ;;  %v2142_v38 = vld [vmem:[%s2334_s19 + $0x8] sm:$0xff] }
 0x719   : > { %v2106_v24 = vunpack.i.h.bf16 %v2959_v27  ;;  %v2105_v28 = vunpack.i.l.bf16 %v2959_v27  ;;  %v1846_v9 = vpack.c.bf16 %v1268_v48, %v1266_v46  ;;  %v1336_v46 = vld [vmem:[%s3176_s8 + $0x10] sm:$0xff] }
 0x71a   : > { %1831 = vmatpush1.bf16.msra.mxu0 %v1830_v19  ;;  %v2974_v29 = vpop.permute.xlu1 %2123 }
 0x71b   : > { %1833 = vmatprep.subr.bf16.mxu0 %v1832_v10  ;;  %v2126_v60 = vunpack.i.h.bf16 %v2974_v29  ;;  %v2125_v14 = vunpack.i.l.bf16 %v2974_v29 }
 0x71c   : > { %v2109_v26 = vpop.permute.xlu0 %2108 }
 0x71d   : > { %v2111_v53 = vunpack.i.h.bf16 %v2109_v26  ;;  %v2110_v37 = vunpack.i.l.bf16 %v2109_v26  ;;  %v1289_v29 = vsel %vm526_vm3, %v2106_v24, %v2126_v60  ;;  %v1288_v27 = vsel %vm526_vm3, %v2105_v28, %v2125_v14 }
 0x71e   : > { %1835 = vmatpush1.bf16.msra.mxu0 %v1834_v17  ;;  %v2129_v47 = vpop.permute.xlu1 %2128  ;;  %v1293_v17 = vsel %vm526_vm3, %v2126_v60, %v2106_v24  ;;  %v1296_v26 = vsel %vm2423_vm7, %v2743_v44, %v1291_v59 }
 0x71f   : > { %1837 = vmatprep.subr.bf16.mxu0 %v1836_v30  ;;  %v2131_v42 = vunpack.i.h.bf16 %v2129_v47  ;;  %v2130_v50 = vunpack.i.l.bf16 %v2129_v47  ;;  %v1318_v62 = vsel %vm535_vm4, %v2110_v37, %v2115_v52  ;;  %v1319_v49 = vsel %vm535_vm4, %v2111_v53, %v2116_v51 }
 0x720   : > { %v1322_v2 = vsel %vm535_vm4, %v2115_v52, %v2110_v37  ;;  %v1323_v4 = vsel %vm535_vm4, %v2116_v51, %v2111_v53  ;;  %v2119_v5 = vpop.permute.xlu0 %2118  ;;  %v1326_v16 = vsel %vm2427_vm8, %v2747_v45, %v1318_v62  ;;  %v1328_v3 = vsel %vm2427_vm8, %v2743_v44, %v1319_v49  ;;  %v2143_v51 = vld [vmem:[%s2334_s19] sm:$0xff]  ;;  %s406_s19 = scalar_lea.vmem [#allocation2], %s1698_s28  ;;  %s2148_s28 = sshll.u32 %s2214_s20, 4  ;;  %s2149_s28 = int_to_ptr.vmem [resolvable:$false] %s2148_s28 }
 0x721   : > { %v2121_v11 = vunpack.i.h.bf16 %v2119_v5  ;;  %v2120_v12 = vunpack.i.l.bf16 %v2119_v5  ;;  %v1327_v1 = vsel %vm2419_vm6, %v2737_v35, %v1322_v2  ;;  %v1329_v13 = vsel %vm2419_vm6, %v2732_v34, %v1323_v4  ;;  %s1632_s29 = sshll.u32 %s406_s19, 4  ;;  %s2150_s2 = scalar_lea.vmem %s2149_s28, 1024  ;;  %s3117_s29 = int_to_ptr.vmem [resolvable:$true] %s1632_s29 }
 0x722   : > { %1839 = vmatpush1.bf16.msra.mxu0 %v1838_v31  ;;  %v1864_v0 = vpack.c.bf16 %v1329_v13, %v1327_v1  ;;  %v1866_v61 = vpack.c.bf16 %v1328_v3, %v1326_v16  ;;  %v1848_v30 = vpack.c.bf16 %v1297_v20, %v1295_v7  ;;  %v1294_v31 = vsel %vm2423_vm7, %v2747_v45, %v2992_v36  ;;  %s2144_s25 = scalar_lea.vmem %s3117_s29, 512  ;;  %p2151_p0 = scmp.lt.s32.totalorder %s3117_s29, %s2149_s28 }
 0x723   : > { %v1320_v10 = vsel %vm535_vm4, %v2120_v12, %v2130_v50  ;;  %v1321_v19 = vsel %vm535_vm4, %v2121_v11, %v2131_v42  ;;  %v1324_v18 = vsel %vm535_vm4, %v2130_v50, %v2120_v12  ;;  %v1325_v22 = vsel %vm535_vm4, %v2131_v42, %v2121_v11  ;;  %1841 = vmatprep.subr.bf16.mxu0 %v1840_v39  ;;  %p2145_p11 = scmp.ne.s32.totalorder %s3117_s29, %s2144_s25  ;;  %p2152_p1 = scmp.lt.s32.totalorder %s2150_s2, %s2144_s25 }
 0x724   : > { %1865 = vmatprep.subr.bf16.mxu1 %v1864_v0  ;;  %v1331_v23 = vsel %vm2419_vm6, %v2777_v58, %v1324_v18  ;;  %v1333_v63 = vsel %vm2419_vm6, %v2772_v57, %v1325_v22  ;;  %v1330_v25 = vsel %vm2427_vm8, %v2766_v54, %v1320_v10  ;;  %v1332_v33 = vsel %vm2427_vm8, %v2762_v55, %v1321_v19 }
 0x725   : > { %v1868_v15 = vpack.c.bf16 %v1333_v63, %v1331_v23  ;;  %1867 = vmatpush1.bf16.msra.mxu1 %v1866_v61  ;;  %v1870_v21 = vpack.c.bf16 %v1332_v33, %v1330_v25  ;;  %v1292_v39 = vsel %vm526_vm3, %v2125_v14, %v2105_v28  ;;  %v1850_v41 = vpack.c.bf16 %v1296_v26, %v1294_v31  ;;  %p2146_p12 = pnand %p2145_p11, %p2319_p5  ;;  %p2153_p2 = por %p2152_p1, %p2151_p0 }
 0x726   : > { %1843 = vmatpush1.bf16.msra.mxu0 %v1842_v40  ;;  %v1299_v40 = vsel %vm2415_vm5, %v2777_v58, %v1288_v27  ;;  %v1298_v36 = vsel %vm2423_vm7, %v2766_v54, %v1292_v39  ;;  %v1300_v48 = vsel %vm2423_vm7, %v2762_v55, %v1293_v17  ;;  %v1856_v53 = vpack.c.bf16 %v2732_v34, %v2737_v35  ;;  %v1513_v34 = vld [vmem:[%s3178_s10 + $0x8] sm:$0xff] }
 0x727   : > { %1845 = vmatprep.subr.bf16.mxu0 %v1844_v43  ;;  %1869 = vmatprep.subr.bf16.mxu1 %v1868_v15  ;;  %v1301_v43 = vsel %vm2415_vm5, %v2772_v57, %v1289_v29  ;;  %v1854_v52 = vpack.c.bf16 %v1300_v48, %v1298_v36  ;;  %v1858_v37 = vpack.c.bf16 %v2743_v44, %v2747_v45  ;;  %v1334_v44 = vld [vmem:[%s3176_s8] sm:$0xff]  ;;  %v1337_v45 = vld [vmem:[%s3176_s8 + $0x18] sm:$0xff]  ;;  %p2147_p13 = pneg %p2146_p12 }
 0x728   : > { %v1852_v32 = vpack.c.bf16 %v1301_v43, %v1299_v40  ;;  %v1860_v47 = vpack.c.bf16 %v2772_v57, %v2777_v58  ;;  %v1862_v35 = vpack.c.bf16 %v2762_v55, %v2766_v54 }
 0x729   : > { %1871 = vmatpush1.bf16.msra.mxu1 %v1870_v21  ;;  %p2154_p3 = pnand %p2153_p2, %p2147_p13 }
 0x72a   : > { %1847 = vmatpush1.bf16.msra.mxu0 %v1846_v9  ;;  %1533 = vmatprep.subr.mxu1 %v2142_v38 }
 0x72b   : > { %1849 = vmatprep.subr.bf16.mxu0 %v1848_v30 }
 0x72c   : > { %1713 = vmatmul.mubr.msk.f32.vlgmr.msra.gmra.mrb[16].mxu1 %vm747_vm10, %v1336_v46 }
 0x72d   : > { %1505 = vmatprep.mubr.f32.mxu1 %v2213_v56  ;;  %1534 = vmatpush1.msra.mxu1 %v2143_v51 }
 0x72e   : > { %1851 = vmatpush1.bf16.msra.mxu0 %v1850_v41 }
 0x72f   : > { %1853 = vmatprep.subr.bf16.mxu0 %v1852_v32  ;;  %v1350_v60 = vpop.permute.xlu1 %1349 }
 0x730   : > { %1714 = vmatmul.mubr.msk.f32.gmra.mrb[18].mxu1 %vm747_vm10, %v1339_v6 }
 0x731   : > { %1597 = vmatprep.mubr.f32.mxu1 %v2213_v56  ;;  %v1345_v54 = vpop.permute.xlu0 %1344 }
 0x732   : > { %1855 = vmatpush1.bf16.msra.mxu0 %v1854_v52 }
 0x733   : > { %1857 = vmatprep.subr.bf16.mxu0 %v1856_v53  ;;  %v1524_v14 = vpop.permute.xlu1 %1523 }
 0x734   : > { %1715 = vmatmul.mubr.msk.f32.vlgmr.msra.gmra.mrb[16].mxu1 %vm1526_vm11, %v1512_v8 }
 0x735   : > { %1603 = vmatprep.mubr.f32.mxu1 %v2213_v56  ;;  %v1338_v56 = vld [vmem:[%s3176_s8 + $0x20] sm:$0xff]  ;;  %v1519_v49 = vpop.permute.xlu0 %1518 }
 0x736   : > { %1859 = vmatpush1.bf16.msra.mxu0 %v1858_v37 }
 0x737   : > { %1861 = vmatprep.subr.bf16.mxu0 %v1860_v47 }
 0x738   : > { %1716 = vmatmul.mubr.msk.f32.gmra.mrb[18].mxu1 %vm1526_vm11, %v1513_v34 }
 0x73a   : > { %1863 = vmatpush1.bf16.msra.mxu0 %v1862_v35 }
 0x73d   : > { %1423 = vmatmul.mubr.f32.vlgmr.msra.gmra.mrb[0].mxu0 %v1334_v44 }
 0x73e   : > { %1428 = vmatprep.mubr.f32.mxu0 %v1338_v56 }
 0x741   : > { %1429 = vmatmul.mubr.f32.gmra.mrb[2].mxu0 %v1337_v45 }
 0x807   : > { %v1599_v57 = vpop.f32.mrb[16].mxu1 }
 0x808   : > { %v1601_v55 = vpop.f32.mrb[17].mxu1 }
 0x80b   : > { %v1605_v58 = vpop.f32.mrb[18].mxu1 }
 0x80c   : > { %v1607_v59 = vpop.f32.mrb[19].mxu1 }
 0x810   : > { %v1424_v42 = vpop.f32.mrb[0].mxu0 }
 0x811   : > { %v1425_v50 = vadd.f32 %v1424_v42, %v1345_v54  ;;  %v1426_v62 = vpop.f32.mrb[1].mxu0 }
 0x812   : > { %v1427_v2 = vadd.f32 %v1426_v62, %v1345_v54 }
 0x813   : > { %v1873_v4 = vadd.f32 %v1519_v49, %v1425_v50 }
 0x814   : > { %v1876_v5 = vadd.f32 %v1519_v49, %v1427_v2  ;;  %v1430_v11 = vpop.f32.mrb[2].mxu0 }
 0x815   : > { %v1874_v12 = vadd.f32 %v1873_v4, %v1599_v57  ;;  %v1431_v1 = vadd.f32 %v1430_v11, %v1350_v60  ;;  %v1432_v13 = vpop.f32.mrb[3].mxu0 }
 0x816   : > { %v1877_v0 = vadd.f32 %v1876_v5, %v1601_v55  ;;  %v1433_v16 = vadd.f32 %v1432_v13, %v1350_v60 }
 0x817   : > { %1614 = vst [vmem:[%s406_s19] sm:$0xff] %v1874_v12  ;;  %v1879_v3 = vadd.f32 %v1524_v14, %v1431_v1 }
 0x818   : > { %1615 = vst [vmem:[%s406_s19 + $0x8] sm:$0xff] %v1877_v0  ;;  %v1882_v10 = vadd.f32 %v1524_v14, %v1433_v16 }
 0x819   : > { %v1880_v19 = vadd.f32 %v1879_v3, %v1605_v58 }
 0x81a   : > { %v1883_v18 = vadd.f32 %v1882_v10, %v1607_v59 }
 0x81b   : > { %1616 = vst [vmem:[%s406_s19 + $0x10] sm:$0xff] %v1880_v19 }
 0x81c   : > { %1617 = vst [vmem:[%s406_s19 + $0x18] sm:$0xff] %v1883_v18 }
 0x81d   : > { %2157 = shalt.err (!%p2154_p3)
}
 0x81e   : > { %s2158_s26 = scalar_lea.hbm %s3122_s16, 512  ;;  %s2162_s17 = scalar_lea.hbm %s3180_s12, 1024 }
 0x81f   : > { %p2159_p4 = scmp.ne.s32.totalorder %s3122_s16, %s2158_s26  ;;  %p2163_p9 = scmp.lt.u32.totalorder %s3122_s16, %s3180_s12 }
 0x820   : > { %p2164_p10 = scmp.lt.u32.totalorder %s2162_s17, %s2158_s26  ;;  %p2166_p12 = scmp.lt.u32.totalorder %s2158_s26, %s3122_s16 }
 0x821   : > { %p2160_p7 = pnand %p2159_p4, %p2319_p5 }
 0x822   : > { %p2165_p11 = por %p2164_p10, %p2163_p9 }
 0x823   : > { %p2161_p8 = pneg %p2160_p7 }
 0x824   : > { %p2167_p13 = por %p2166_p12, %p2165_p11 }
 0x826   : > { %p2168_p0 = pnand %p2167_p13, %p2161_p8 }
 0x828   : > { %2171 = shalt.err (!%p2168_p0)
}
 0x829   : > { %s2215_s2 = smov 256  }
 0x82a   : > { %1894 = dma.vmem_to_hbm [thread:$0]  (%p2319_p5), %s3117_s29, 512, %s3122_s16, %s3126_s18, %s2215_s2, %s2215_s2, %s3203_s0  }
 0x82b PF: > { %p1900_p1 = scmp.ge.s32.totalorder %s2206_s24, 2  ;;  %s1647_s25 = sand.u32 1, %s2194_s21  }
 0x82c   : > { %s1648_s28 = scalar_lea.sflag [#allocation3], %s1647_s25 }
 0x82d   : > { %p1897_p2 = pnand %p1900_p1, %p2323_p6 }
 0x82f   : > { %2189 = dma.done.wait (!%p1897_p2), %s1648_s28, 512  }
 0x830   : > { %2191 = vsyncadd (!%p1897_p2), %s1648_s28, 4294966784  ;;  %p22_p3 = scmp.ge.s32.totalorder %s2306_s27, 4   ;;  %s3206_s21 = smov %s2198_s22 }
 0x831   : > { %s3207_s22 = smov %s2202_s23  ;;  %s3208_s23 = smov %s2317_s30 }
 0x832   : > { %s3209_s24 = smov %s2306_s27  ;;  %24 = sbr.rel (!%p22_p3) target bundleno = 7 (0x7), region = 103 }
 0x839   :  { %1653 = vsyncpa [#allocation3], 1 }
 0x83a   :  { %1655 = vsyncpa [#allocation3 + $0x1], 1 }

</bundles_post_ra>
